<compile_context>
chip_gen: v6e
topology: v6e:2x2x1
jax: 0.10.0
libtpu: 0.0.40
codegen_flags: <defaults>
</compile_context>

<pallas_src>
import jax
import jax.numpy as jnp
from jax.experimental import pallas as pl
from jax.experimental.pallas import tpu as pltpu

# ---- problem sizes (small, consistent with the module) ----
B, N, H = 2, 8, 32          # batch, tokens, hidden_dim (= in_features)
E, EH = 16, 16              # dependency_edge_dim, edge_hidden_dim
NH = 2                      # n_heads
VOCAB = 8                   # number of dependency edge types (0 == "no edge")
NEG_INF = -9e15
EPS = 1e-10

# ---- packed weight-slab layout (all blocks start on 8-row boundaries) ----
SLAB_LANES = NH * H          # 64
R_WET = 0                    # (H, NH*H)      rows   0..31 , lanes 0..63
R_WAL = H                    # (H, H)         rows  32..63 , lanes 0..31
R_WM = 2 * H                 # (VOCAB, NH*EH) rows  64..71 , lanes 0..31
R_WEW = R_WM + 8             # (NH, EH)       rows  72..73 , lanes 0..15
R_WAW = R_WM + 16            # (H, 2)         rows  80..111, lanes 0..1
R_BET = R_WAW + H            # (1, NH*H)      row  112     , lanes 0..63
R_BAL = R_BET + 8            # (1, H)         row  120     , lanes 0..31
R_BAW = R_BAL + 8            # (1, 1)         row  128     , lane  0
SLAB_ROWS = R_BAW + 8        # 136


# ============================================================================
# Single fused kernel: folded embedding lookup + both heads of Trans_Gat_Layer
# + head gating, for the whole (tiny) batch in one grid step.
# ============================================================================
def muti_gat_kernel(aspect_ref,            # SMEM (B, 2) int32  (scalar prefetch)
                    dep_ref,               # (B*N*N, 1) int32
                    adj_ref,               # (B, N, N) f32
                    x_ref,                 # (B, N, H) f32
                    slab_ref,              # (SLAB_ROWS, SLAB_LANES) f32 packed weights
                    out_ref,               # (B, N, H) f32
                    attn_ref):             # (NH, B, N, N) f32
    x3 = x_ref[...]                        # (B, N, H)
    adj3 = adj_ref[...]                    # (B, N, N)

    # ---- aspect row masks from SMEM scalars (no HBM mask array) ----
    b_ids = jax.lax.broadcasted_iota(jnp.int32, (B, N, 1), 0)
    r_ids = jax.lax.broadcasted_iota(jnp.int32, (B, N, 1), 1)
    begin = jnp.zeros((B, N, 1), jnp.int32)
    end = jnp.zeros((B, N, 1), jnp.int32)
    for b in range(B):                     # B == 2, statically unrolled
        sel = b_ids == b
        begin = jnp.where(sel, aspect_ref[b, 0], begin)
        end = jnp.where(sel, aspect_ref[b, 1], end)
    in_aspect = (r_ids >= begin) & (r_ids <= end)               # (B, N, 1) bool

    # AdaptiveMaxPool2d([1, H]) over the multiplicatively masked input == max over
    # tokens (masked rows contribute exactly 0, same as the torch reference).
    aspect_x = jnp.max(jnp.where(in_aspect, x3, 0.0), axis=1)   # (B, H)

    # ---- edge path: one-hot lookup of folded (embed @ W_edge_mapping), both
    #      batches AND both heads in a single matmul, then relu ----
    dep_col = dep_ref[...]                                      # (B*N*N, 1) int32
    vocab_iota = jax.lax.broadcasted_iota(jnp.int32, (B * N * N, VOCAB), 1)
    onehot = ((dep_col == vocab_iota) & (vocab_iota > 0)).astype(jnp.float32)
    wm_folded = slab_ref[R_WM:R_WM + VOCAB, 0:NH * EH]          # (VOCAB, NH*EH)
    em_all = jnp.maximum(
        jnp.dot(onehot, wm_folded, preferred_element_type=jnp.float32), 0.0
    )                                                           # (B*N*N, NH*EH)

    # ---- shared projection  x @ W_edge_to (+ b): both heads in ONE matmul ----
    wet_both = slab_ref[R_WET:R_WET + H, :]                     # (H, NH*H)
    bet_both = slab_ref[R_BET:R_BET + 1, :]                     # (1, NH*H)
    x2 = x3.reshape(B * N, H)
    hx_both = (jnp.dot(x2, wet_both, preferred_element_type=jnp.float32)
               + bet_both)                                      # (B*N, NH*H)

    wew_all = slab_ref[R_WEW:R_WEW + NH, 0:EH]                  # (NH, EH)

    h_edges = []
    pooled = []
    for h in range(NH):                    # heads statically unrolled
        # edge_weight_liner: contract edge-hidden dim with wew[h]
        em_h = em_all[:, h * EH:(h + 1) * EH].reshape(B * N, N, EH)
        wew_h = wew_all[h:h + 1, :]                             # (1, EH)
        ew = jnp.sum(em_h * wew_h[None, :, :], axis=-1)         # (B*N, N)
        ew = ew.reshape(B, N, N)

        # normalize by |row mean| + 1e-10 — EXACT divide (denominator may be ~1e-10)
        mean_abs = jnp.abs(jnp.mean(ew, axis=-1, keepdims=True)) + EPS
        ew = ew / mean_abs

        # adjacency-masked softmax over neighbours
        masked = jnp.where(adj3 != 0.0, ew, jnp.full_like(ew, NEG_INF))
        m = jnp.max(masked, axis=-1, keepdims=True)
        e = jnp.exp(masked - m)
        attn = e * pl.reciprocal(jnp.sum(e, axis=-1, keepdims=True), approx=True)

        # h_edge = relu(attention @ (x @ W_edge_to + b))   (batched over B)
        hx_h = hx_both[:, h * H:(h + 1) * H].reshape(B, N, H)
        he = jnp.maximum(
            jnp.einsum('bij,bjd->bid', attn, hx_h,
                       preferred_element_type=jnp.float32), 0.0)    # (B, N, H)

        h_edges.append(he)
        pooled.append(jnp.max(jnp.where(in_aspect, he, 0.0), axis=1))   # (B, H)
        attn_ref[h] = attn

    # ---- head gating: tanh(aspect_liner), relu(aspect_weight), softmax over heads ----
    pooled_all = jnp.concatenate(pooled, axis=0)                # (NH*B, H), head-major
    wal = slab_ref[R_WAL:R_WAL + H, 0:H]                        # (H, H)
    bal = slab_ref[R_BAL:R_BAL + 1, 0:H]                        # (1, H)
    a_h = jnp.tanh(jnp.dot(pooled_all, wal,
                           preferred_element_type=jnp.float32) + bal)   # (NH*B, H)

    # Linear on concat([stack_x, aspect_h]) == sum of linears on the two halves.
    waw2 = slab_ref[R_WAW:R_WAW + H, 0:2]                       # (H, 2)
    baw = slab_ref[R_BAW:R_BAW + 1, 0:1]                        # (1, 1)
    sx = jnp.dot(aspect_x, waw2[:, 0:1], preferred_element_type=jnp.float32)  # (B, 1)
    sh = jnp.dot(a_h, waw2[:, 1:2], preferred_element_type=jnp.float32)       # (NH*B, 1)

    # relu then softmax over heads (per batch) — no cross-sublane reduce needed.
    logits = [jnp.maximum(sh[h * B:(h + 1) * B] + sx + baw, 0.0) for h in range(NH)]
    mx = logits[0]
    for l in logits[1:]:
        mx = jnp.maximum(mx, l)
    es = [jnp.exp(l - mx) for l in logits]
    denom = es[0]
    for e_ in es[1:]:
        denom = denom + e_
    inv = pl.reciprocal(denom, approx=True)                     # (B, 1)

    # softmax-weighted heads, mean over heads (== / NH), dropout (skipped), relu
    acc = jnp.zeros((B, N, H), jnp.float32)
    for h in range(NH):
        acc = acc + h_edges[h] * (es[h] * inv)[:, :, None]      # (B,1,1) broadcast
    out_ref[...] = jnp.maximum(acc * (1.0 / NH), 0.0)


# ============================================================================
# Wrapper
# ============================================================================
@jax.jit
def muti_gat_forward(weight_slab, x, adj, dep, aspect_idx):
    # metadata-only reshape in HBM: dep types flattened so the kernel never reshapes
    # across the lane dim.
    dep_flat = dep.reshape(B * N * N, 1).astype(jnp.int32)

    h_prime, attention_edge = pl.pallas_call(
        muti_gat_kernel,
        out_shape=(jax.ShapeDtypeStruct((B, N, H), jnp.float32),
                   jax.ShapeDtypeStruct((NH, B, N, N), jnp.float32)),
        grid_spec=pltpu.PrefetchScalarGridSpec(
            num_scalar_prefetch=1,                  # aspect_idx -> SMEM
            grid=(1,),                              # single fused step (B handled inside)
            in_specs=[
                pl.BlockSpec((B * N * N, 1), lambda i, a: (0, 0)),          # dep (int32)
                pl.BlockSpec((B, N, N), lambda i, a: (0, 0, 0)),            # adj
                pl.BlockSpec((B, N, H), lambda i, a: (0, 0, 0)),            # x
                pl.BlockSpec((SLAB_ROWS, SLAB_LANES), lambda i, a: (0, 0)),  # weight slab
            ],
            out_specs=[
                pl.BlockSpec((B, N, H), lambda i, a: (0, 0, 0)),            # h_prime
                pl.BlockSpec((NH, B, N, N), lambda i, a: (0, 0, 0, 0)),     # attention
            ],
        ),
        compiler_params=pltpu.CompilerParams(dimension_semantics=("arbitrary",)),
    )(aspect_idx, dep_flat, adj, x, weight_slab)

    # torch.stack over heads of the per-layer attention maps -> (NH, B, N, N)
    return h_prime, attention_edge


# ============================================================================
# Deterministic parameter init (synthetic; mirrors the module's shapes)
# ============================================================================
def init_params(key):
    ks = jax.random.split(key, 10)

    def xavier(k, shape, fan_in):
        return jax.random.normal(k, shape, jnp.float32) / jnp.sqrt(float(fan_in))

    return {
        "embed": xavier(ks[0], (VOCAB, E), E),          # edge_embed table
        "wem":   xavier(ks[1], (NH, E, EH), E),         # edge_mapping (no bias), per head
        "wew":   xavier(ks[2], (NH, 1, EH), EH),        # edge_weight_liner (no bias), per head
        "wet":   xavier(ks[3], (NH, H, H), H),          # edge_to weight, per head
        "bet":   0.01 * xavier(ks[4], (NH, 1, H), H),   # edge_to bias, per head
        "wal":   xavier(ks[5], (H, H), H),              # aspect_liner weight
        "bal":   0.01 * xavier(ks[6], (1, H), H),       # aspect_liner bias
        "waw":   xavier(ks[7], (2 * H, 1), 2 * H),      # aspect_weight weight
        "baw":   0.01 * xavier(ks[8], (1, 1), 1),       # aspect_weight bias
    }


def pack_params(params):
    """One-time weight preprocessing: fold embed into edge_mapping, batch per-head
    weights over heads, and pack everything into a single 8-row-aligned f32 slab."""
    wet_both = jnp.concatenate([params["wet"][h] for h in range(NH)], axis=1)   # (H, NH*H)
    bet_both = jnp.concatenate([params["bet"][h] for h in range(NH)], axis=1)   # (1, NH*H)
    wm_folded = jnp.concatenate(
        [params["embed"] @ params["wem"][h] for h in range(NH)], axis=1)        # (VOCAB, NH*EH)
    wew_all = jnp.concatenate([params["wew"][h] for h in range(NH)], axis=0)    # (NH, EH)
    waw2 = jnp.concatenate([params["waw"][:H], params["waw"][H:]], axis=1)      # (H, 2)

    slab = jnp.zeros((SLAB_ROWS, SLAB_LANES), jnp.float32)
    slab = slab.at[R_WET:R_WET + H, :].set(wet_both)
    slab = slab.at[R_WAL:R_WAL + H, 0:H].set(params["wal"])
    slab = slab.at[R_WM:R_WM + VOCAB, 0:NH * EH].set(wm_folded)
    slab = slab.at[R_WEW:R_WEW + NH, 0:EH].set(wew_all)
    slab = slab.at[R_WAW:R_WAW + H, 0:2].set(waw2)
    slab = slab.at[R_BET:R_BET + 1, :].set(bet_both)
    slab = slab.at[R_BAL:R_BAL + 1, 0:H].set(params["bal"])
    slab = slab.at[R_BAW:R_BAW + 1, 0:1].set(params["baw"])
    return slab


if __name__ == "__main__":
    key = jax.random.PRNGKey(0)
    k_x, k_dep, k_par = jax.random.split(key, 3)

    x = jax.random.normal(k_x, (B, N, H), jnp.float32)
    dep = jax.random.randint(k_dep, (B, N, N), 0, VOCAB).astype(jnp.int32)
    adj = jnp.where(dep != 0, 1.0, 0.0).astype(jnp.float32)
    adj = jnp.maximum(adj, jnp.eye(N, dtype=jnp.float32)[None])      # self loops
    aspect_double_idx = jnp.array([[1, 3], [4, 6]], jnp.int32)

    params = init_params(k_par)
    weight_slab = jax.block_until_ready(pack_params(params))         # one-time packing

    h_prime, attention_edge = muti_gat_forward(weight_slab, x, adj, dep, aspect_double_idx)
    jax.block_until_ready((h_prime, attention_edge))

    assert h_prime.shape == (B, N, H)
    assert attention_edge.shape == (NH, B, N, N)
    assert bool(jnp.all(jnp.isfinite(h_prime)))
    assert bool(jnp.all(jnp.isfinite(attention_edge)))
    print("KERNEL_OK")
</pallas_src>

<mosaic_0001>
module attributes {stable_mosaic.version = 11 : i64} {
  func.func @muti_gat_kernel(%arg0: i32, %arg1: memref<2x2xi32, #tpu.memory_space<smem>>, %arg2: memref<128x1xi32, #tpu.memory_space<vmem>>, %arg3: memref<2x8x8xf32, #tpu.memory_space<vmem>>, %arg4: memref<2x8x32xf32, #tpu.memory_space<vmem>>, %arg5: memref<136x64xf32, #tpu.memory_space<vmem>>, %arg6: memref<2x8x32xf32, #tpu.memory_space<vmem>>, %arg7: memref<2x2x8x8xf32, #tpu.memory_space<vmem>>) attributes {dimension_semantics = [#tpu.dimension_semantics<arbitrary>], iteration_bounds = array<i64: 1>, scalar_prefetch = 1 : i64, scratch_operands = 0 : i64, tpu.core_type = #tpu.core_type<tc>, window_params = [{pipeline_mode = #tpu.pipeline_mode<synchronous>, transform_indices = @transform_0, window_bounds = array<i64: 128, 1>}, {pipeline_mode = #tpu.pipeline_mode<synchronous>, transform_indices = @transform_1, window_bounds = array<i64: 2, 8, 8>}, {pipeline_mode = #tpu.pipeline_mode<synchronous>, transform_indices = @transform_2, window_bounds = array<i64: 2, 8, 32>}, {pipeline_mode = #tpu.pipeline_mode<synchronous>, transform_indices = @transform_3, window_bounds = array<i64: 136, 64>}, {pipeline_mode = #tpu.pipeline_mode<synchronous>, transform_indices = @transform_4, window_bounds = array<i64: 2, 8, 32>}, {pipeline_mode = #tpu.pipeline_mode<synchronous>, transform_indices = @transform_5, window_bounds = array<i64: 2, 2, 8, 8>}]} {
    %c0 = arith.constant 0 : index
    %c0_0 = arith.constant 0 : index
    %c0_1 = arith.constant 0 : index
    %0 = vector.load %arg4[%c0, %c0_0, %c0_1] : memref<2x8x32xf32, #tpu.memory_space<vmem>>, vector<2x8x32xf32>
    %c0_2 = arith.constant 0 : index
    %c0_3 = arith.constant 0 : index
    %c0_4 = arith.constant 0 : index
    %1 = vector.load %arg3[%c0_2, %c0_3, %c0_4] : memref<2x8x8xf32, #tpu.memory_space<vmem>>, vector<2x8x8xf32>
    %2 = tpu.iota {dimensions = array<i32: 0>} : vector<2x8x1xi32>
    %3 = tpu.iota {dimensions = array<i32: 1>} : vector<2x8x1xi32>
    %c0_i32 = arith.constant 0 : i32
    %4 = vector.broadcast %c0_i32 : i32 to vector<2x8x1xi32>
    %c0_i32_5 = arith.constant 0 : i32
    %5 = vector.broadcast %c0_i32_5 : i32 to vector<2x8x1xi32>
    %c0_i32_6 = arith.constant 0 : i32
    %6 = vector.broadcast %c0_i32_6 : i32 to vector<2x8x1xi32>
    %7 = arith.cmpi eq, %2, %6 : vector<2x8x1xi32>
    %c0_7 = arith.constant 0 : index
    %c0_8 = arith.constant 0 : index
    %8 = memref.load %arg1[%c0_7, %c0_8] : memref<2x2xi32, #tpu.memory_space<smem>>
    %9 = vector.broadcast %8 : i32 to vector<2x8x1xi32>
    %10 = arith.select %7, %9, %4 : vector<2x8x1xi1>, vector<2x8x1xi32>
    %c0_9 = arith.constant 0 : index
    %c1 = arith.constant 1 : index
    %11 = memref.load %arg1[%c0_9, %c1] : memref<2x2xi32, #tpu.memory_space<smem>>
    %12 = vector.broadcast %11 : i32 to vector<2x8x1xi32>
    %13 = arith.select %7, %12, %5 : vector<2x8x1xi1>, vector<2x8x1xi32>
    %c1_i32 = arith.constant 1 : i32
    %14 = vector.broadcast %c1_i32 : i32 to vector<2x8x1xi32>
    %15 = arith.cmpi eq, %2, %14 : vector<2x8x1xi32>
    %c1_10 = arith.constant 1 : index
    %c0_11 = arith.constant 0 : index
    %16 = memref.load %arg1[%c1_10, %c0_11] : memref<2x2xi32, #tpu.memory_space<smem>>
    %17 = vector.broadcast %16 : i32 to vector<2x8x1xi32>
    %18 = arith.select %15, %17, %10 : vector<2x8x1xi1>, vector<2x8x1xi32>
    %c1_12 = arith.constant 1 : index
    %c1_13 = arith.constant 1 : index
    %19 = memref.load %arg1[%c1_12, %c1_13] : memref<2x2xi32, #tpu.memory_space<smem>>
    %20 = vector.broadcast %19 : i32 to vector<2x8x1xi32>
    %21 = arith.select %15, %20, %13 : vector<2x8x1xi1>, vector<2x8x1xi32>
    %22 = arith.cmpi sge, %3, %18 : vector<2x8x1xi32>
    %23 = arith.cmpi sle, %3, %21 : vector<2x8x1xi32>
    %24 = arith.andi %22, %23 : vector<2x8x1xi1>
    %cst = arith.constant 0.000000e+00 : f32
    %25 = vector.shape_cast %24 : vector<2x8x1xi1> to vector<2x8x1xi1>
    %26 = vector.broadcast %25 : vector<2x8x1xi1> to vector<2x8x32xi1>
    %27 = vector.broadcast %cst : f32 to vector<2x8x32xf32>
    %28 = arith.select %26, %0, %27 : vector<2x8x32xi1>, vector<2x8x32xf32>
    %cst_14 = arith.constant dense<0xFF800000> : vector<2x32xf32>
    %29 = vector.multi_reduction <maximumf>, %28, %cst_14 [1] : vector<2x8x32xf32> to vector<2x32xf32>
    %c0_15 = arith.constant 0 : index
    %c0_16 = arith.constant 0 : index
    %30 = vector.load %arg2[%c0_15, %c0_16] : memref<128x1xi32, #tpu.memory_space<vmem>>, vector<128x1xi32>
    %31 = tpu.iota {dimensions = array<i32: 1>} : vector<128x8xi32>
    %32 = vector.broadcast %30 : vector<128x1xi32> to vector<128x8xi32>
    %33 = arith.cmpi eq, %32, %31 : vector<128x8xi32>
    %c0_i32_17 = arith.constant 0 : i32
    %34 = vector.broadcast %c0_i32_17 : i32 to vector<128x8xi32>
    %35 = arith.cmpi sgt, %31, %34 : vector<128x8xi32>
    %36 = arith.andi %33, %35 : vector<128x8xi1>
    %37 = arith.extui %36 : vector<128x8xi1> to vector<128x8xi32>
    %38 = arith.sitofp %37 : vector<128x8xi32> to vector<128x8xf32>
    %c64 = arith.constant 64 : index
    %c0_18 = arith.constant 0 : index
    %39 = vector.load %arg5[%c64, %c0_18] : memref<136x64xf32, #tpu.memory_space<vmem>>, vector<8x32xf32>
    %cst_19 = arith.constant dense<0.000000e+00> : vector<128x32xf32>
    %40 = tpu.matmul %38, %39, %cst_19 {dimension_numbers = #tpu.dot_dimension_numbers<[1], [0], [0], [1], [0, 0, 1, 1], [], []>} : vector<128x8xf32>, vector<8x32xf32>, vector<128x32xf32> -> vector<128x32xf32>
    %cst_20 = arith.constant 0.000000e+00 : f32
    %41 = vector.broadcast %cst_20 : f32 to vector<128x32xf32>
    %42 = arith.maximumf %40, %41 : vector<128x32xf32>
    %c0_21 = arith.constant 0 : index
    %c0_22 = arith.constant 0 : index
    %43 = vector.load %arg5[%c0_21, %c0_22] : memref<136x64xf32, #tpu.memory_space<vmem>>, vector<32x64xf32>
    %c112 = arith.constant 112 : index
    %c0_23 = arith.constant 0 : index
    %44 = vector.load %arg5[%c112, %c0_23] : memref<136x64xf32, #tpu.memory_space<vmem>>, vector<1x64xf32>
    %45 = vector.shape_cast %0 : vector<2x8x32xf32> to vector<16x32xf32>
    %cst_24 = arith.constant dense<0.000000e+00> : vector<16x64xf32>
    %46 = tpu.matmul %45, %43, %cst_24 {dimension_numbers = #tpu.dot_dimension_numbers<[1], [0], [0], [1], [0, 0, 1, 1], [], []>} : vector<16x32xf32>, vector<32x64xf32>, vector<16x64xf32> -> vector<16x64xf32>
    %47 = vector.broadcast %44 : vector<1x64xf32> to vector<16x64xf32>
    %48 = arith.addf %46, %47 : vector<16x64xf32>
    %c72 = arith.constant 72 : index
    %c0_25 = arith.constant 0 : index
    %49 = vector.load %arg5[%c72, %c0_25] : memref<136x64xf32, #tpu.memory_space<vmem>>, vector<2x16xf32>
    %50 = vector.extract_strided_slice %42 {offsets = [0, 0], sizes = [128, 16], strides = [1, 1]} : vector<128x32xf32> to vector<128x16xf32>
    %51 = vector.shape_cast %50 : vector<128x16xf32> to vector<16x8x16xf32>
    %52 = vector.extract_strided_slice %49 {offsets = [0, 0], sizes = [1, 16], strides = [1, 1]} : vector<2x16xf32> to vector<1x16xf32>
    %53 = vector.shape_cast %52 : vector<1x16xf32> to vector<1x1x16xf32>
    %54 = vector.broadcast %53 : vector<1x1x16xf32> to vector<16x8x16xf32>
    %55 = arith.mulf %51, %54 : vector<16x8x16xf32>
    %cst_26 = arith.constant dense<0.000000e+00> : vector<16x8xf32>
    %56 = vector.multi_reduction <add>, %55, %cst_26 [2] : vector<16x8x16xf32> to vector<16x8xf32>
    %57 = vector.shape_cast %56 : vector<16x8xf32> to vector<2x8x8xf32>
    %cst_27 = arith.constant dense<0.000000e+00> : vector<2x8xf32>
    %58 = vector.multi_reduction <add>, %57, %cst_27 [2] : vector<2x8x8xf32> to vector<2x8xf32>
    %59 = vector.shape_cast %58 : vector<2x8xf32> to vector<2x8x1xf32>
    %cst_28 = arith.constant 8.000000e+00 : f32
    %60 = vector.broadcast %cst_28 : f32 to vector<2x8x1xf32>
    %61 = arith.divf %59, %60 : vector<2x8x1xf32>
    %62 = math.absf %61 : vector<2x8x1xf32>
    %cst_29 = arith.constant 1.000000e-10 : f32
    %63 = vector.broadcast %cst_29 : f32 to vector<2x8x1xf32>
    %64 = arith.addf %62, %63 : vector<2x8x1xf32>
    %65 = vector.broadcast %64 : vector<2x8x1xf32> to vector<2x8x8xf32>
    %66 = arith.divf %57, %65 : vector<2x8x8xf32>
    %cst_30 = arith.constant 0.000000e+00 : f32
    %67 = vector.broadcast %cst_30 : f32 to vector<2x8x8xf32>
    %68 = arith.cmpf one, %1, %67 : vector<2x8x8xf32>
    %cst_31 = arith.constant -9.000000e+15 : f32
    %69 = vector.broadcast %cst_31 : f32 to vector<2x8x8xf32>
    %70 = arith.select %68, %66, %69 : vector<2x8x8xi1>, vector<2x8x8xf32>
    %cst_32 = arith.constant dense<0xFF800000> : vector<2x8xf32>
    %71 = vector.multi_reduction <maximumf>, %70, %cst_32 [2] : vector<2x8x8xf32> to vector<2x8xf32>
    %72 = vector.shape_cast %71 : vector<2x8xf32> to vector<2x8x1xf32>
    %73 = vector.broadcast %72 : vector<2x8x1xf32> to vector<2x8x8xf32>
    %74 = arith.subf %70, %73 : vector<2x8x8xf32>
    %75 = math.exp %74 : vector<2x8x8xf32>
    %cst_33 = arith.constant dense<0.000000e+00> : vector<2x8xf32>
    %76 = vector.multi_reduction <add>, %75, %cst_33 [2] : vector<2x8x8xf32> to vector<2x8xf32>
    %77 = vector.shape_cast %76 : vector<2x8xf32> to vector<2x8x1xf32>
    %78 = tpu.reciprocal %77 {approx = true} : vector<2x8x1xf32> -> vector<2x8x1xf32>
    %79 = vector.broadcast %78 : vector<2x8x1xf32> to vector<2x8x8xf32>
    %80 = arith.mulf %75, %79 : vector<2x8x8xf32>
    %81 = vector.extract_strided_slice %48 {offsets = [0, 0], sizes = [16, 32], strides = [1, 1]} : vector<16x64xf32> to vector<16x32xf32>
    %82 = vector.shape_cast %81 : vector<16x32xf32> to vector<2x8x32xf32>
    "tpu.trace_start"() <{level = 10 : i32, message = "bij,bjd->bid"}> : () -> ()
    %cst_34 = arith.constant dense<0.000000e+00> : vector<2x8x32xf32>
    %83 = tpu.matmul %80, %82, %cst_34 {dimension_numbers = #tpu.dot_dimension_numbers<[2], [1], [1], [2], [0, 0, 0, 1, 1, 2], [0], [0]>} : vector<2x8x8xf32>, vector<2x8x32xf32>, vector<2x8x32xf32> -> vector<2x8x32xf32>
    "tpu.trace_stop"() : () -> ()
    %cst_35 = arith.constant 0.000000e+00 : f32
    %84 = vector.broadcast %cst_35 : f32 to vector<2x8x32xf32>
    %85 = arith.maximumf %83, %84 : vector<2x8x32xf32>
    %cst_36 = arith.constant 0.000000e+00 : f32
    %86 = vector.shape_cast %24 : vector<2x8x1xi1> to vector<2x8x1xi1>
    %87 = vector.broadcast %86 : vector<2x8x1xi1> to vector<2x8x32xi1>
    %88 = vector.broadcast %cst_36 : f32 to vector<2x8x32xf32>
    %89 = arith.select %87, %85, %88 : vector<2x8x32xi1>, vector<2x8x32xf32>
    %cst_37 = arith.constant dense<0xFF800000> : vector<2x32xf32>
    %90 = vector.multi_reduction <maximumf>, %89, %cst_37 [1] : vector<2x8x32xf32> to vector<2x32xf32>
    %c0_38 = arith.constant 0 : index
    %c0_39 = arith.constant 0 : index
    %c0_40 = arith.constant 0 : index
    %c0_41 = arith.constant 0 : index
    %91 = vector.load %arg7[%c0_38, %c0_39, %c0_40, %c0_41] : memref<2x2x8x8xf32, #tpu.memory_space<vmem>>, vector<1x2x8x8xf32>
    %92 = vector.shape_cast %91 : vector<1x2x8x8xf32> to vector<2x8x8xf32>
    %93 = vector.shape_cast %80 : vector<2x8x8xf32> to vector<1x2x8x8xf32>
    tpu.vector_store %arg7[%c0_38, %c0_39, %c0_40, %c0_41], %93 {strides = array<i32>} : memref<2x2x8x8xf32, #tpu.memory_space<vmem>>, vector<1x2x8x8xf32>,
    %94 = vector.extract_strided_slice %42 {offsets = [0, 16], sizes = [128, 16], strides = [1, 1]} : vector<128x32xf32> to vector<128x16xf32>
    %95 = vector.shape_cast %94 : vector<128x16xf32> to vector<16x8x16xf32>
    %96 = vector.extract_strided_slice %49 {offsets = [1, 0], sizes = [1, 16], strides = [1, 1]} : vector<2x16xf32> to vector<1x16xf32>
    %97 = vector.shape_cast %96 : vector<1x16xf32> to vector<1x1x16xf32>
    %98 = vector.broadcast %97 : vector<1x1x16xf32> to vector<16x8x16xf32>
    %99 = arith.mulf %95, %98 : vector<16x8x16xf32>
    %cst_42 = arith.constant dense<0.000000e+00> : vector<16x8xf32>
    %100 = vector.multi_reduction <add>, %99, %cst_42 [2] : vector<16x8x16xf32> to vector<16x8xf32>
    %101 = vector.shape_cast %100 : vector<16x8xf32> to vector<2x8x8xf32>
    %cst_43 = arith.constant dense<0.000000e+00> : vector<2x8xf32>
    %102 = vector.multi_reduction <add>, %101, %cst_43 [2] : vector<2x8x8xf32> to vector<2x8xf32>
    %103 = vector.shape_cast %102 : vector<2x8xf32> to vector<2x8x1xf32>
    %cst_44 = arith.constant 8.000000e+00 : f32
    %104 = vector.broadcast %cst_44 : f32 to vector<2x8x1xf32>
    %105 = arith.divf %103, %104 : vector<2x8x1xf32>
    %106 = math.absf %105 : vector<2x8x1xf32>
    %cst_45 = arith.constant 1.000000e-10 : f32
    %107 = vector.broadcast %cst_45 : f32 to vector<2x8x1xf32>
    %108 = arith.addf %106, %107 : vector<2x8x1xf32>
    %109 = vector.broadcast %108 : vector<2x8x1xf32> to vector<2x8x8xf32>
    %110 = arith.divf %101, %109 : vector<2x8x8xf32>
    %cst_46 = arith.constant 0.000000e+00 : f32
    %111 = vector.broadcast %cst_46 : f32 to vector<2x8x8xf32>
    %112 = arith.cmpf one, %1, %111 : vector<2x8x8xf32>
    %cst_47 = arith.constant -9.000000e+15 : f32
    %113 = vector.broadcast %cst_47 : f32 to vector<2x8x8xf32>
    %114 = arith.select %112, %110, %113 : vector<2x8x8xi1>, vector<2x8x8xf32>
    %cst_48 = arith.constant dense<0xFF800000> : vector<2x8xf32>
    %115 = vector.multi_reduction <maximumf>, %114, %cst_48 [2] : vector<2x8x8xf32> to vector<2x8xf32>
    %116 = vector.shape_cast %115 : vector<2x8xf32> to vector<2x8x1xf32>
    %117 = vector.broadcast %116 : vector<2x8x1xf32> to vector<2x8x8xf32>
    %118 = arith.subf %114, %117 : vector<2x8x8xf32>
    %119 = math.exp %118 : vector<2x8x8xf32>
    %cst_49 = arith.constant dense<0.000000e+00> : vector<2x8xf32>
    %120 = vector.multi_reduction <add>, %119, %cst_49 [2] : vector<2x8x8xf32> to vector<2x8xf32>
    %121 = vector.shape_cast %120 : vector<2x8xf32> to vector<2x8x1xf32>
    %122 = tpu.reciprocal %121 {approx = true} : vector<2x8x1xf32> -> vector<2x8x1xf32>
    %123 = vector.broadcast %122 : vector<2x8x1xf32> to vector<2x8x8xf32>
    %124 = arith.mulf %119, %123 : vector<2x8x8xf32>
    %125 = vector.extract_strided_slice %48 {offsets = [0, 32], sizes = [16, 32], strides = [1, 1]} : vector<16x64xf32> to vector<16x32xf32>
    %126 = vector.shape_cast %125 : vector<16x32xf32> to vector<2x8x32xf32>
    "tpu.trace_start"() <{level = 10 : i32, message = "bij,bjd->bid"}> : () -> ()
    %cst_50 = arith.constant dense<0.000000e+00> : vector<2x8x32xf32>
    %127 = tpu.matmul %124, %126, %cst_50 {dimension_numbers = #tpu.dot_dimension_numbers<[2], [1], [1], [2], [0, 0, 0, 1, 1, 2], [0], [0]>} : vector<2x8x8xf32>, vector<2x8x32xf32>, vector<2x8x32xf32> -> vector<2x8x32xf32>
    "tpu.trace_stop"() : () -> ()
    %cst_51 = arith.constant 0.000000e+00 : f32
    %128 = vector.broadcast %cst_51 : f32 to vector<2x8x32xf32>
    %129 = arith.maximumf %127, %128 : vector<2x8x32xf32>
    %cst_52 = arith.constant 0.000000e+00 : f32
    %130 = vector.shape_cast %24 : vector<2x8x1xi1> to vector<2x8x1xi1>
    %131 = vector.broadcast %130 : vector<2x8x1xi1> to vector<2x8x32xi1>
    %132 = vector.broadcast %cst_52 : f32 to vector<2x8x32xf32>
    %133 = arith.select %131, %129, %132 : vector<2x8x32xi1>, vector<2x8x32xf32>
    %cst_53 = arith.constant dense<0xFF800000> : vector<2x32xf32>
    %134 = vector.multi_reduction <maximumf>, %133, %cst_53 [1] : vector<2x8x32xf32> to vector<2x32xf32>
    %c1_54 = arith.constant 1 : index
    %c0_55 = arith.constant 0 : index
    %c0_56 = arith.constant 0 : index
    %c0_57 = arith.constant 0 : index
    %135 = vector.load %arg7[%c1_54, %c0_55, %c0_56, %c0_57] : memref<2x2x8x8xf32, #tpu.memory_space<vmem>>, vector<1x2x8x8xf32>
    %136 = vector.shape_cast %135 : vector<1x2x8x8xf32> to vector<2x8x8xf32>
    %137 = vector.shape_cast %124 : vector<2x8x8xf32> to vector<1x2x8x8xf32>
    tpu.vector_store %arg7[%c1_54, %c0_55, %c0_56, %c0_57], %137 {strides = array<i32>} : memref<2x2x8x8xf32, #tpu.memory_space<vmem>>, vector<1x2x8x8xf32>,
    %138 = tpu.concatenate %90, %134 in 0 : vector<2x32xf32>, vector<2x32xf32> -> vector<4x32xf32>
    %c32 = arith.constant 32 : index
    %c0_58 = arith.constant 0 : index
    %139 = vector.load %arg5[%c32, %c0_58] : memref<136x64xf32, #tpu.memory_space<vmem>>, vector<32x32xf32>
    %c120 = arith.constant 120 : index
    %c0_59 = arith.constant 0 : index
    %140 = vector.load %arg5[%c120, %c0_59] : memref<136x64xf32, #tpu.memory_space<vmem>>, vector<1x32xf32>
    %cst_60 = arith.constant dense<0.000000e+00> : vector<4x32xf32>
    %141 = tpu.matmul %138, %139, %cst_60 {dimension_numbers = #tpu.dot_dimension_numbers<[1], [0], [0], [1], [0, 0, 1, 1], [], []>} : vector<4x32xf32>, vector<32x32xf32>, vector<4x32xf32> -> vector<4x32xf32>
    %142 = vector.broadcast %140 : vector<1x32xf32> to vector<4x32xf32>
    %143 = arith.addf %141, %142 : vector<4x32xf32>
    %144 = math.tanh %143 : vector<4x32xf32>
    %c80 = arith.constant 80 : index
    %c0_61 = arith.constant 0 : index
    %145 = vector.load %arg5[%c80, %c0_61] : memref<136x64xf32, #tpu.memory_space<vmem>>, vector<32x2xf32>
    %c128 = arith.constant 128 : index
    %c0_62 = arith.constant 0 : index
    %146 = vector.load %arg5[%c128, %c0_62] : memref<136x64xf32, #tpu.memory_space<vmem>>, vector<1x1xf32>
    %147 = vector.extract_strided_slice %145 {offsets = [0, 0], sizes = [32, 1], strides = [1, 1]} : vector<32x2xf32> to vector<32x1xf32>
    %cst_63 = arith.constant dense<0.000000e+00> : vector<2x1xf32>
    %148 = tpu.matmul %29, %147, %cst_63 {dimension_numbers = #tpu.dot_dimension_numbers<[1], [0], [0], [1], [0, 0, 1, 1], [], []>} : vector<2x32xf32>, vector<32x1xf32>, vector<2x1xf32> -> vector<2x1xf32>
    %149 = vector.extract_strided_slice %145 {offsets = [0, 1], sizes = [32, 1], strides = [1, 1]} : vector<32x2xf32> to vector<32x1xf32>
    %cst_64 = arith.constant dense<0.000000e+00> : vector<4x1xf32>
    %150 = tpu.matmul %144, %149, %cst_64 {dimension_numbers = #tpu.dot_dimension_numbers<[1], [0], [0], [1], [0, 0, 1, 1], [], []>} : vector<4x32xf32>, vector<32x1xf32>, vector<4x1xf32> -> vector<4x1xf32>
    %151 = vector.extract_strided_slice %150 {offsets = [0, 0], sizes = [2, 1], strides = [1, 1]} : vector<4x1xf32> to vector<2x1xf32>
    %152 = arith.addf %151, %148 : vector<2x1xf32>
    %153 = vector.broadcast %146 : vector<1x1xf32> to vector<2x1xf32>
    %154 = arith.addf %152, %153 : vector<2x1xf32>
    %cst_65 = arith.constant 0.000000e+00 : f32
    %155 = vector.broadcast %cst_65 : f32 to vector<2x1xf32>
    %156 = arith.maximumf %154, %155 : vector<2x1xf32>
    %157 = vector.extract_strided_slice %150 {offsets = [2, 0], sizes = [2, 1], strides = [1, 1]} : vector<4x1xf32> to vector<2x1xf32>
    %158 = arith.addf %157, %148 : vector<2x1xf32>
    %159 = vector.broadcast %146 : vector<1x1xf32> to vector<2x1xf32>
    %160 = arith.addf %158, %159 : vector<2x1xf32>
    %cst_66 = arith.constant 0.000000e+00 : f32
    %161 = vector.broadcast %cst_66 : f32 to vector<2x1xf32>
    %162 = arith.maximumf %160, %161 : vector<2x1xf32>
    %163 = arith.maximumf %156, %162 : vector<2x1xf32>
    %164 = arith.subf %156, %163 : vector<2x1xf32>
    %165 = math.exp %164 : vector<2x1xf32>
    %166 = arith.subf %162, %163 : vector<2x1xf32>
    %167 = math.exp %166 : vector<2x1xf32>
    %168 = arith.addf %165, %167 : vector<2x1xf32>
    %169 = tpu.reciprocal %168 {approx = true} : vector<2x1xf32> -> vector<2x1xf32>
    %cst_67 = arith.constant 0.000000e+00 : f32
    %170 = vector.broadcast %cst_67 : f32 to vector<2x8x32xf32>
    %171 = arith.mulf %165, %169 : vector<2x1xf32>
    %172 = vector.shape_cast %171 : vector<2x1xf32> to vector<2x1x1xf32>
    %173 = vector.broadcast %172 : vector<2x1x1xf32> to vector<2x8x32xf32>
    %174 = arith.mulf %85, %173 : vector<2x8x32xf32>
    %175 = arith.addf %170, %174 : vector<2x8x32xf32>
    %176 = arith.mulf %167, %169 : vector<2x1xf32>
    %177 = vector.shape_cast %176 : vector<2x1xf32> to vector<2x1x1xf32>
    %178 = vector.broadcast %177 : vector<2x1x1xf32> to vector<2x8x32xf32>
    %179 = arith.mulf %129, %178 : vector<2x8x32xf32>
    %180 = arith.addf %175, %179 : vector<2x8x32xf32>
    %cst_68 = arith.constant 5.000000e-01 : f32
    %181 = vector.broadcast %cst_68 : f32 to vector<2x8x32xf32>
    %182 = arith.mulf %180, %181 : vector<2x8x32xf32>
    %cst_69 = arith.constant 0.000000e+00 : f32
    %183 = vector.broadcast %cst_69 : f32 to vector<2x8x32xf32>
    %184 = arith.maximumf %182, %183 : vector<2x8x32xf32>
    %c0_70 = arith.constant 0 : index
    %c0_71 = arith.constant 0 : index
    %c0_72 = arith.constant 0 : index
    %185 = vector.load %arg6[%c0_70, %c0_71, %c0_72] : memref<2x8x32xf32, #tpu.memory_space<vmem>>, vector<2x8x32xf32>
    tpu.vector_store %arg6[%c0_70, %c0_71, %c0_72], %184 {strides = array<i32>} : memref<2x8x32xf32, #tpu.memory_space<vmem>>, vector<2x8x32xf32>,
    return
  }
  func.func @transform_0(%arg0: i32, %arg1: memref<2x2xi32, #tpu.memory_space<smem>>) -> (i32, i32) {
    %c0_i32 = arith.constant 0 : i32
    %c0_i32_0 = arith.constant 0 : i32
    %c0_i32_1 = arith.constant 0 : i32
    return %c0_i32, %c0_i32_0 : i32, i32
  }
  func.func @transform_1(%arg0: i32, %arg1: memref<2x2xi32, #tpu.memory_space<smem>>) -> (i32, i32, i32) {
    %c0_i32 = arith.constant 0 : i32
    %c0_i32_0 = arith.constant 0 : i32
    %c0_i32_1 = arith.constant 0 : i32
    %c0_i32_2 = arith.constant 0 : i32
    return %c0_i32, %c0_i32_0, %c0_i32_1 : i32, i32, i32
  }
  func.func @transform_2(%arg0: i32, %arg1: memref<2x2xi32, #tpu.memory_space<smem>>) -> (i32, i32, i32) {
    %c0_i32 = arith.constant 0 : i32
    %c0_i32_0 = arith.constant 0 : i32
    %c0_i32_1 = arith.constant 0 : i32
    %c0_i32_2 = arith.constant 0 : i32
    return %c0_i32, %c0_i32_0, %c0_i32_1 : i32, i32, i32
  }
  func.func @transform_3(%arg0: i32, %arg1: memref<2x2xi32, #tpu.memory_space<smem>>) -> (i32, i32) {
    %c0_i32 = arith.constant 0 : i32
    %c0_i32_0 = arith.constant 0 : i32
    %c0_i32_1 = arith.constant 0 : i32
    return %c0_i32, %c0_i32_0 : i32, i32
  }
  func.func @transform_4(%arg0: i32, %arg1: memref<2x2xi32, #tpu.memory_space<smem>>) -> (i32, i32, i32) {
    %c0_i32 = arith.constant 0 : i32
    %c0_i32_0 = arith.constant 0 : i32
    %c0_i32_1 = arith.constant 0 : i32
    %c0_i32_2 = arith.constant 0 : i32
    return %c0_i32, %c0_i32_0, %c0_i32_1 : i32, i32, i32
  }
  func.func @transform_5(%arg0: i32, %arg1: memref<2x2xi32, #tpu.memory_space<smem>>) -> (i32, i32, i32, i32) {
    %c0_i32 = arith.constant 0 : i32
    %c0_i32_0 = arith.constant 0 : i32
    %c0_i32_1 = arith.constant 0 : i32
    %c0_i32_2 = arith.constant 0 : i32
    %c0_i32_3 = arith.constant 0 : i32
    return %c0_i32, %c0_i32_0, %c0_i32_1, %c0_i32_2 : i32, i32, i32, i32
  }
}

</mosaic_0001>

<bundles_post_ra>
// kernel: muti_gat_forward.1
= control target key start
LH: loop header
LB: loop body
LE: loop exit
PB: predicated region body
PF: predicated region fallthrough
CT: control target
= control target key end

     0   :  { %s3430_s0 = inlined_call_operand.vmem [shape: s32[2,2], index: 0, kind: input, shape index: {}]   ;;  %s3431_s1 = inlined_call_operand.vmem [shape: s32[128,1], index: 1, kind: input, shape index: {}]   ;;  %s3432_s2 = inlined_call_operand.vmem [shape: f32[2,8,8], index: 2, kind: input, shape index: {}]   ;;  %s3433_s3 = inlined_call_operand.vmem [shape: f32[2,8,32], index: 3, kind: input, shape index: {}]   ;;  %s3434_s4 = inlined_call_operand.vmem [shape: f32[136,64], index: 4, kind: input, shape index: {}]   ;;  %s3435_s5 = inlined_call_operand.hbm [shape: f32[2,8,32], index: 5, kind: output, shape index: {0}]   ;;  %s3436_s6 = inlined_call_operand.hbm [shape: f32[2,2,8,8], index: 6, kind: output, shape index: {1}]  }
   0x1   :  { %s12_s23 = sshll.u32 %s3430_s0, 4  ;;  %s13_s23 = int_to_ptr.vmem [resolvable:$true] %s12_s23 }
   0x2   :  { %s2548_s24 = scalar_lea.vmem %s13_s23, 32  ;;  %p2553_p1 = scmp.lt.s32.totalorder %s13_s23, %s13_s23 }
   0x3   :  { %p2549_p0 = scmp.ne.s32.totalorder %s13_s23, %s2548_s24  ;;  %p2554_p2 = scmp.lt.s32.totalorder %s2548_s24, %s2548_s24 }
   0x5   :  { %p2555_p3 = por %p2554_p2, %p2553_p1 }
   0x7   :  { %p2556_p4 = pnand %p2555_p3, %p2549_p0 }
   0x9   :  { %2559 = shalt.err (!%p2556_p4)  }
   0xa   :  { %s2606_s25 = smov [#allocation3]  }
   0xb   :  { %15 = dma.vmem_to_smem %s13_s23, 32, %s2606_s25, [#allocation2] }
   0xc   :  { %2600 = dma.done.wait [#allocation2], 32 }
   0xd   :  { %2601 = vsyncadd [#allocation2], 4294967264 }
   0xe   :  { %17 = sfence }
   0xf   :  { %18 = vsyncpa [#allocation5], 0  ;;  %v69_v0 = vld [vmem:[%s3431_s1] sm:$0xff]  ;;  %v71_v1 = vld [vmem:[%s3431_s1 + $0x10] sm:$0xff]  ;;  %v2607_v2 = vmov 0  }
  0x10   :  { %2458 = vset.pattern.permute.xlu0 %v2607_v2  ;;  %2459 = vset.pattern.permute.xlu1 %v2607_v2  ;;  %v70_v3 = vld [vmem:[%s3431_s1 + $0x8] sm:$0xff]  ;;  %v72_v4 = vld [vmem:[%s3431_s1 + $0x18] sm:$0xff]  ;;  %v200_v5 = vld [vmem:[%s3434_s4 + $0x40] sm:$0xff] }
  0x11   :  { %88 = vperm.xlu0 %2458, %v69_v0   ;;  %94 = vperm.xlu1 %2459, %v71_v1  }
  0x12   :  { %19 = vsyncpa [#allocation7], 0  ;;  %v73_v6 = vld [vmem:[%s3431_s1 + $0x20] sm:$0xff]  ;;  %v74_v7 = vld [vmem:[%s3431_s1 + $0x28] sm:$0xff]  ;;  %2355 = vmatprep.subr.mxu0 %v200_v5  ;;  %v2608_v8 = vmov 0.0   ;;  %v32_v19 = vlaneseq  ;;  %s2609_s12 = smov 16  }
  0x13   :  { %2356 = vmatpush3.msra.mxu0 %v200_v5  ;;  %v75_v9 = vld [vmem:[%s3431_s1 + $0x30] sm:$0xff]  ;;  %v76_v10 = vld [vmem:[%s3431_s1 + $0x38] sm:$0xff]  ;;  %v77_v11 = vld [vmem:[%s3431_s1 + $0x40] sm:$0xff]  ;;  %vm201_vm4 = vcmask 64512   ;;  %s2612_s0 = smov 96   ;;  %s2613_s16 = smov 127  }
  0x14   :  { %2423 = vmatprep.subr.mxu0 %v2608_v8  ;;  %v78_v12 = vld [vmem:[%s3431_s1 + $0x48] sm:$0xff]  ;;  %v79_v13 = vld [vmem:[%s3431_s1 + $0x50] sm:$0xff]  ;;  %v80_v14 = vld [vmem:[%s3431_s1 + $0x58] sm:$0xff]  ;;  %v2709_v20 = vshrl.u32 %v32_v19, 7  ;;  %v2721_v24 = vand.u32 127, %v32_v19  ;;  %s2263_s21 = sld [smem:[#allocation3 + $0x80]] }
  0x15   :  { %91 = vperm.xlu0 %2458, %v70_v3   ;;  %97 = vperm.xlu1 %2459, %v72_v4   ;;  %v81_v15 = vld [vmem:[%s3431_s1 + $0x60] sm:$0xff]  ;;  %v82_v16 = vld [vmem:[%s3431_s1 + $0x68] sm:$0xff]  ;;  %v83_v17 = vld [vmem:[%s3431_s1 + $0x70] sm:$0xff]  ;;  %s2264_s22 = sld [smem:[#allocation3 + $0x81]] }
  0x16   :  { %v84_v18 = vld [vmem:[%s3431_s1 + $0x78] sm:$0xff]  ;;  %v2714_v21 = vld [vmem:[%s3434_s4 + $0x48] sm:$0x3]  ;;  %v2717_v22 = vsub.s32 1, %v2709_v20  ;;  %vm151_vm0 = vcmp.gt.s32.totalorder %v2721_v24, 0  ;;  %s2610_s1 = smov 112  }
  0x17   :  { %v2811_v3 = vsub.s32 0, %v2709_v20  ;;  %s34_s23 = sld [smem:[#allocation3]] }
  0x18   :  { %v1140_v23 = vrot.slane %v2714_v21, %v2717_v22  ;;  %s2262_s24 = sld [smem:[#allocation3 + $0x1]] }
  0x19   :  { %100 = vperm.xlu0 %2458, %v73_v6   ;;  %103 = vperm.xlu1 %2459, %v74_v7   ;;  %v2815_v6 = vrot.slane %v2714_v21, %v2811_v3 }
  0x1d   :  { %106 = vperm.xlu0 %2458, %v75_v9   ;;  %109 = vperm.xlu1 %2459, %v76_v10  }
  0x21   :  { %112 = vperm.xlu0 %2458, %v77_v11   ;;  %115 = vperm.xlu1 %2459, %v78_v12  }
  0x25   :  { %118 = vperm.xlu0 %2458, %v79_v13   ;;  %121 = vperm.xlu1 %2459, %v80_v14  }
  0x29   :  { %124 = vperm.xlu0 %2458, %v81_v15   ;;  %127 = vperm.xlu1 %2459, %v82_v16  }
  0x2d   :  { %130 = vperm.xlu0 %2458, %v83_v17   ;;  %133 = vperm.xlu1 %2459, %v84_v18  }
  0x31   :  { %1142 = vrot.lane.b32.xlu0 %v1140_v23, %s2609_s12 }
  0x8c   :  { %v89_v25 = vpop.permute.xlu0 %88  ;;  %v95_v26 = vpop.permute.xlu1 %94 }
  0x8d   :  { %vm135_vm1 = vcmp.eq.s32.totalorder %v89_v25, %v2721_v24  ;;  %vm137_vm2 = vcmp.eq.s32.totalorder %v95_v26, %v2721_v24 }
  0x8e   :  { %vm154_vm3 = vmand %vm137_vm2, %vm151_vm0 }
  0x8f   :  { %vm152_vm5 = vmand %vm135_vm1, %vm151_vm0  ;;  %v2267_v30 = vsel %vm154_vm3, 1.0, %v2608_v8 }
  0x90   :  { %v92_v27 = vpop.permute.xlu0 %91  ;;  %v2265_v28 = vsel %vm152_vm5, 1.0, %v2608_v8  ;;  %v98_v29 = vpop.permute.xlu1 %97 }
  0x91   :  { %vm136_vm6 = vcmp.eq.s32.totalorder %v92_v27, %v2721_v24  ;;  %2357 = vmatprep.mubr.msk.f32.mxu0 %vm201_vm4, %v2265_v28  ;;  %vm138_vm7 = vcmp.eq.s32.totalorder %v98_v29, %v2721_v24 }
  0x92   :  { %vm153_vm8 = vmand %vm136_vm6, %vm151_vm0 }
  0x93   :  { %vm155_vm9 = vmand %vm138_vm7, %vm151_vm0  ;;  %v2266_v31 = vsel %vm153_vm8, 1.0, %v2608_v8 }
  0x94   :  { %v101_v32 = vpop.permute.xlu0 %100  ;;  %2358 = vmatmul.mubr.msk.f32.vlgmr.msra.gmra.mxu0 %vm201_vm4, %v2266_v31  ;;  %v104_v33 = vpop.permute.xlu1 %103  ;;  %v2268_v34 = vsel %vm155_vm9, 1.0, %v2608_v8 }
  0x95   :  { %vm139_vm10 = vcmp.eq.s32.totalorder %v101_v32, %v2721_v24  ;;  %2360 = vmatprep.mubr.msk.f32.mxu0 %vm201_vm4, %v2267_v30  ;;  %vm140_vm11 = vcmp.eq.s32.totalorder %v104_v33, %v2721_v24 }
  0x96   :  { %vm156_vm12 = vmand %vm139_vm10, %vm151_vm0 }
  0x97   :  { %vm157_vm13 = vmand %vm140_vm11, %vm151_vm0  ;;  %v2269_v35 = vsel %vm156_vm12, 1.0, %v2608_v8 }
  0x98   :  { %v107_v36 = vpop.permute.xlu0 %106  ;;  %2361 = vmatmul.mubr.msk.f32.gmra.mxu0 %vm201_vm4, %v2268_v34  ;;  %v110_v37 = vpop.permute.xlu1 %109  ;;  %v2270_v38 = vsel %vm157_vm13, 1.0, %v2608_v8 }
  0x99   :  { %vm141_vm14 = vcmp.eq.s32.totalorder %v107_v36, %v2721_v24  ;;  %2363 = vmatprep.mubr.msk.f32.mxu0 %vm201_vm4, %v2269_v35  ;;  %vm142_vm15 = vcmp.eq.s32.totalorder %v110_v37, %v2721_v24 }
  0x9a   :  { %vm158_vm1 = vmand %vm141_vm14, %vm151_vm0 }
  0x9b   :  { %vm159_vm2 = vmand %vm142_vm15, %vm151_vm0  ;;  %v2271_v39 = vsel %vm158_vm1, 1.0, %v2608_v8 }
  0x9c   :  { %v113_v40 = vpop.permute.xlu0 %112  ;;  %2364 = vmatmul.mubr.msk.f32.gmra.mxu0 %vm201_vm4, %v2270_v38  ;;  %v116_v41 = vpop.permute.xlu1 %115  ;;  %v2272_v42 = vsel %vm159_vm2, 1.0, %v2608_v8 }
  0x9d   :  { %vm143_vm3 = vcmp.eq.s32.totalorder %v113_v40, %v2721_v24  ;;  %2366 = vmatprep.mubr.msk.f32.mxu0 %vm201_vm4, %v2271_v39  ;;  %vm144_vm5 = vcmp.eq.s32.totalorder %v116_v41, %v2721_v24 }
  0x9e   :  { %vm160_vm6 = vmand %vm143_vm3, %vm151_vm0 }
  0x9f   :  { %vm161_vm7 = vmand %vm144_vm5, %vm151_vm0  ;;  %v2273_v43 = vsel %vm160_vm6, 1.0, %v2608_v8  ;;  %vm651_vm6 = vcmask 1041409  }
  0xa0   :  { %v119_v44 = vpop.permute.xlu0 %118  ;;  %2367 = vmatmul.mubr.msk.f32.gmra.mxu0 %vm201_vm4, %v2272_v42  ;;  %v122_v45 = vpop.permute.xlu1 %121  ;;  %v2274_v46 = vsel %vm161_vm7, 1.0, %v2608_v8  ;;  %vm653_vm7 = vcmask 1042434  }
  0xa1   :  { %vm145_vm8 = vcmp.eq.s32.totalorder %v119_v44, %v2721_v24  ;;  %2369 = vmatprep.mubr.msk.f32.mxu0 %vm201_vm4, %v2273_v43  ;;  %vm146_vm9 = vcmp.eq.s32.totalorder %v122_v45, %v2721_v24 }
  0xa2   :  { %vm162_vm10 = vmand %vm145_vm8, %vm151_vm0  ;;  %vm655_vm8 = vcmask 1043459  }
  0xa3   :  { %vm163_vm11 = vmand %vm146_vm9, %vm151_vm0  ;;  %v2275_v47 = vsel %vm162_vm10, 1.0, %v2608_v8  ;;  %vm657_vm9 = vcmask 1044484   ;;  %vm659_vm10 = vcmask 1045509  }
  0xa4   :  { %v125_v48 = vpop.permute.xlu0 %124  ;;  %2370 = vmatmul.mubr.msk.f32.gmra.mxu0 %vm201_vm4, %v2274_v46  ;;  %v128_v49 = vpop.permute.xlu1 %127  ;;  %v2276_v50 = vsel %vm163_vm11, 1.0, %v2608_v8  ;;  %vm661_vm11 = vcmask 1046534  }
  0xa5   :  { %vm147_vm12 = vcmp.eq.s32.totalorder %v125_v48, %v2721_v24  ;;  %2372 = vmatprep.mubr.msk.f32.mxu0 %vm201_vm4, %v2275_v47  ;;  %vm148_vm13 = vcmp.eq.s32.totalorder %v128_v49, %v2721_v24 }
  0xa6   :  { %vm164_vm14 = vmand %vm147_vm12, %vm151_vm0  ;;  %vm663_vm12 = vcmask 1047559  }
  0xa7   :  { %vm165_vm15 = vmand %vm148_vm13, %vm151_vm0  ;;  %v2277_v51 = vsel %vm164_vm14, 1.0, %v2608_v8  ;;  %vm54_vm13 = vcmask 261120  }
  0xa8   :  { %v131_v52 = vpop.permute.xlu0 %130  ;;  %2373 = vmatmul.mubr.msk.f32.gmra.mxu0 %vm201_vm4, %v2276_v50  ;;  %v134_v53 = vpop.permute.xlu1 %133  ;;  %v2278_v54 = vsel %vm165_vm15, 1.0, %v2608_v8 }
  0xa9   :  { %vm149_vm1 = vcmp.eq.s32.totalorder %v131_v52, %v2721_v24  ;;  %2375 = vmatprep.mubr.msk.f32.mxu0 %vm201_vm4, %v2277_v51  ;;  %vm150_vm2 = vcmp.eq.s32.totalorder %v134_v53, %v2721_v24 }
  0xaa   :  { %vm166_vm3 = vmand %vm149_vm1, %vm151_vm0  ;;  %vm2611_vm1 = vmmov 0  }
  0xab   :  { %vm167_vm5 = vmand %vm150_vm2, %vm151_vm0  ;;  %v2279_v55 = vsel %vm166_vm3, 1.0, %v2608_v8  ;;  %vm522_vm0 = vcmask 130048  }
  0xac   :  { %2376 = vmatmul.mubr.msk.f32.gmra.mxu0 %vm201_vm4, %v2278_v54  ;;  %v2280_v56 = vsel %vm167_vm5, 1.0, %v2608_v8  ;;  %v2804_v58 = vpop.permute.xlu0 %1142 }
  0xad   :  { %2378 = vmatprep.mubr.msk.f32.mxu0 %vm201_vm4, %v2279_v55 }
  0xb0   :  { %2379 = vmatmul.mubr.msk.f32.gmra.mxu0 %vm201_vm4, %v2280_v56 }
  0xb1   :  { %2431 = vmatprep.mubr.msk.f32.mxu0 %vm2611_vm1, %v2608_v8 }
 0x154   :  { %v2359_v57 = vpop.f32.mrf.mxu0 }
 0x155   :  { %v396_v59 = vmax.f32 %v2359_v57, 0.0 }
 0x156   :  { %v316_v60 = vpop.f32.mrf.mxu0 }
 0x157   :  { %v395_v61 = vmax.f32 %v316_v60, 0.0  ;;  %v1146_v62 = vmul.f32 %v2804_v58, %v396_v59  ;;  %v507_v25 = vmul.f32 %v2815_v6, %v396_v59 }
 0x158   :  { %v2362_v63 = vpop.f32.mrf.mxu0 }
 0x159   :  { %1179 = vrot.lane.b32.xlu0 %v1146_v62, %s2610_s1  ;;  %v1145_v0 = vmul.f32 %v2804_v58, %v395_v61  ;;  %v526_v27 = vsel %vm522_vm0, %v507_v25, 0.0  ;;  %v398_v28 = vmax.f32 %v2362_v63, 0.0  ;;  %v506_v29 = vmul.f32 %v2815_v6, %v395_v61 }
 0x15a   :  { %v326_v1 = vpop.f32.mrf.mxu0 }
 0x15b   :  { %1177 = vrot.lane.b32.xlu1 %v1145_v0, %s2610_s1  ;;  %v509_v30 = vmul.f32 %v2815_v6, %v398_v28  ;;  %v523_v31 = vsel %vm522_vm0, %v506_v29, 0.0  ;;  %v1148_v33 = vmul.f32 %v2804_v58, %v398_v28  ;;  %v397_v34 = vmax.f32 %v326_v1, 0.0 }
 0x15c   :  { %v2365_v2 = vpop.f32.mrf.mxu0 }
 0x15d   :  { %v532_v32 = vsel %vm522_vm0, %v509_v30, 0.0  ;;  %v1147_v35 = vmul.f32 %v2804_v58, %v397_v34  ;;  %v508_v36 = vmul.f32 %v2815_v6, %v397_v34  ;;  %v400_v38 = vmax.f32 %v2365_v2, 0.0 }
 0x15e   :  { %v336_v4 = vpop.f32.mrf.mxu0 }
 0x15f   :  { %v529_v37 = vsel %vm522_vm0, %v508_v36, 0.0  ;;  %v511_v39 = vmul.f32 %v2815_v6, %v400_v38  ;;  %v1150_v41 = vmul.f32 %v2804_v58, %v400_v38  ;;  %v399_v42 = vmax.f32 %v336_v4, 0.0 }
 0x160   :  { %v2368_v5 = vpop.f32.mrf.mxu0 }
 0x161   :  { %v402_v7 = vmax.f32 %v2368_v5, 0.0  ;;  %v538_v40 = vsel %vm522_vm0, %v511_v39, 0.0  ;;  %v1149_v43 = vmul.f32 %v2804_v58, %v399_v42  ;;  %v510_v47 = vmul.f32 %v2815_v6, %v399_v42 }
 0x162   :  { %v346_v9 = vpop.f32.mrf.mxu0 }
 0x163   :  { %v2818_v10 = vmul.f32 %v2815_v6, %v402_v7  ;;  %v1152_v44 = vmul.f32 %v2804_v58, %v402_v7  ;;  %v401_v45 = vmax.f32 %v346_v9, 0.0  ;;  %v535_v48 = vsel %vm522_vm0, %v510_v47, 0.0 }
 0x164   :  { %v2371_v11 = vpop.f32.mrf.mxu0 }
 0x165   :  { %v1151_v46 = vmul.f32 %v2804_v58, %v401_v45  ;;  %v512_v49 = vmul.f32 %v2815_v6, %v401_v45  ;;  %v404_v51 = vmax.f32 %v2371_v11, 0.0 }
 0x166   :  { %v2820_v12 = vpop.f32.mrf.mxu0 }
 0x167   :  { %v541_v50 = vsel %vm522_vm0, %v512_v49, 0.0  ;;  %v515_v52 = vmul.f32 %v2815_v6, %v404_v51  ;;  %v1154_v54 = vmul.f32 %v2804_v58, %v404_v51  ;;  %v403_v55 = vmax.f32 %v2820_v12, 0.0 }
 0x168   :  { %v2822_v13 = vpop.f32.mrf.mxu0 }
 0x169   :  { %v550_v53 = vsel %vm522_vm0, %v515_v52, 0.0  ;;  %v1153_v56 = vmul.f32 %v2804_v58, %v403_v55  ;;  %v514_v60 = vmul.f32 %v2815_v6, %v403_v55  ;;  %v406_v62 = vmax.f32 %v2822_v13, 0.0 }
 0x16a   :  { %v2824_v14 = vpop.f32.mrf.mxu0 }
 0x16b   :  { %v547_v61 = vsel %vm522_vm0, %v514_v60, 0.0  ;;  %v405_v63 = vmax.f32 %v2824_v14, 0.0  ;;  %v1156_v1 = vmul.f32 %v2804_v58, %v406_v62  ;;  %v517_v4 = vmul.f32 %v2815_v6, %v406_v62 }
 0x16c   :  { %v2826_v15 = vpop.f32.mrf.mxu0 }
 0x16d   :  { %v516_v0 = vmul.f32 %v2815_v6, %v405_v63  ;;  %v1155_v9 = vmul.f32 %v2804_v58, %v405_v63  ;;  %v408_v11 = vmax.f32 %v2826_v15, 0.0  ;;  %v556_v12 = vsel %vm522_vm0, %v517_v4, 0.0 }
 0x16e   :  { %v376_v16 = vpop.f32.mrf.mxu0 }
 0x16f   :  { %v407_v17 = vmax.f32 %v376_v16, 0.0  ;;  %v553_v2 = vsel %vm522_vm0, %v516_v0, 0.0  ;;  %v519_v13 = vmul.f32 %v2815_v6, %v408_v11  ;;  %v2939_v0 = vsub.s32 %v2721_v24, %v2709_v20 }
 0x170   :  { %v2828_v18 = vpop.f32.mrf.mxu0 }
 0x171   :  { %v2831_v19 = vmul.f32 %v2815_v6, %v407_v17  ;;  %v1157_v57 = vmul.f32 %v2804_v58, %v407_v17  ;;  %v1158_v17 = vmul.f32 %v2804_v58, %v408_v11 }
 0x172   :  { %v386_v21 = vpop.f32.mrf.mxu0 }
 0x173   :  { %v409_v23 = vmax.f32 %v386_v21, 0.0  ;;  %v410_v21 = vmax.f32 %v2828_v18, 0.0  ;;  %v559_v34 = vsel %vm522_vm0, %v2831_v19, 0.0 }
 0x175   :  { %v2835_v26 = vmul.f32 %v2815_v6, %v409_v23  ;;  %v1159_v59 = vmul.f32 %v2804_v58, %v409_v23  ;;  %v562_v23 = vsel %vm522_vm0, %v519_v13, 0.0  ;;  %v1160_v15 = vmul.f32 %v2804_v58, %v410_v21 }
 0x177   :  { %v565_v38 = vsel %vm522_vm0, %v2835_v26, 0.0 }
 0x178   :  { %527 = vadd.xlane.f32.xlu0 %v526_v27 }
 0x17f   :  { %524 = vadd.xlane.f32.xlu1 %v523_v31 }
 0x183   :  { %533 = vadd.xlane.f32.xlu1 %v532_v32 }
 0x18e   :  { %1183 = vrot.lane.b32.xlu0 %v1148_v33, %s2610_s1  ;;  %v544_v33 = vsel %vm522_vm0, %v2818_v10, 0.0 }
 0x194   :  { %1181 = vrot.lane.b32.xlu1 %v1147_v35, %s2610_s1  ;;  %v521_v35 = vmul.f32 %v2815_v6, %v410_v21 }
 0x1ad   :  { %530 = vadd.xlane.f32.xlu0 %v529_v37  ;;  %v568_v37 = vsel %vm522_vm0, %v521_v35, 0.0 }
 0x1b8   :  { %539 = vadd.xlane.f32.xlu1 %v538_v40 }
 0x1c3   :  { %1187 = vrot.lane.b32.xlu0 %v1150_v41, %s2610_s1 }
 0x1c9   :  { %1185 = vrot.lane.b32.xlu1 %v1149_v43, %s2610_s1 }
 0x1cb   :  { %v1180_v5 = vpop.permute.xlu0 %1179 }
 0x1cc   :  { %v1228_v28 = vsel %vm522_vm0, %v1180_v5, 0.0 }
 0x1cd   :  { %1191 = vrot.lane.b32.xlu1 %v1152_v44, %s2610_s1  ;;  %v1178_v7 = vpop.permute.xlu1 %1177 }
 0x1ce   :  { %v1225_v10 = vsel %vm522_vm0, %v1178_v7, 0.0 }
 0x1d1   :  { %1189 = vrot.lane.b32.xlu1 %v1151_v46, %s2610_s1 }
 0x1e2   :  { %536 = vadd.xlane.f32.xlu0 %v535_v48 }
 0x1e6   :  { %542 = vadd.xlane.f32.xlu0 %v541_v50 }
 0x1f5   :  { %551 = vadd.xlane.f32.xlu1 %v550_v53 }
 0x1fc   :  { %1195 = vrot.lane.b32.xlu0 %v1154_v54, %s2610_s1 }
 0x201   :  { %v2887_v14 = vpop.xlane.xlu0 %527 }
 0x202   :  { %v594_v4 = vrot.slane %v2887_v14, %v2939_v0 }
 0x205   :  { %v1184_v25 = vpop.permute.xlu0 %1183 }
 0x206   :  { %1193 = vrot.lane.b32.xlu1 %v1153_v56, %s2610_s1  ;;  %v1234_v30 = vsel %vm522_vm0, %v1184_v25, 0.0 }
 0x208   :  { %v2889_v16 = vpop.xlane.xlu1 %524 }
 0x20a   :  { %1201 = vrot.lane.b32.xlu1 %v1157_v57, %s2610_s1 }
 0x20c   :  { %v2896_v27 = vpop.xlane.xlu1 %533 }
 0x20d   :  { %v602_v11 = vrot.slane %v2896_v27, %v2939_v0 }
 0x20e   :  { %1205 = vrot.lane.b32.xlu1 %v1159_v59, %s2610_s1 }
 0x210   :  { %v1182_v18 = vpop.permute.xlu1 %1181 }
 0x211   :  { %v1231_v31 = vsel %vm522_vm0, %v1182_v18, 0.0 }
 0x21b   :  { %548 = vadd.xlane.f32.xlu0 %v547_v61 }
 0x231   :  { %1199 = vrot.lane.b32.xlu0 %v1156_v1, %s2610_s1  ;;  %v590_v1 = vrot.slane %v2889_v16, %v2939_v0 }
 0x232   :  { %554 = vadd.xlane.f32.xlu1 %v553_v2 }
 0x233   :  { %v652_v7 = vsel %vm651_vm6, %v594_v4, %v590_v1 }
 0x235   :  { %1197 = vrot.lane.b32.xlu0 %v1155_v9, %s2610_s1 }
 0x236   :  { %557 = vadd.xlane.f32.xlu1 %v556_v12  ;;  %v2900_v29 = vpop.xlane.xlu0 %530 }
 0x237   :  { %v598_v2 = vrot.slane %v2900_v29, %v2939_v0 }
 0x239   :  { %1203 = vrot.lane.b32.xlu0 %v1158_v17, %s2610_s1  ;;  %v654_v9 = vsel %vm653_vm7, %v598_v2, %v652_v7 }
 0x23a   :  { %563 = vadd.xlane.f32.xlu1 %v562_v23  ;;  %v1188_v32 = vpop.permute.xlu0 %1187  ;;  %v656_v12 = vsel %vm655_vm8, %v602_v11, %v654_v9 }
 0x23b   :  { %v1240_v58 = vsel %vm522_vm0, %v1188_v32, 0.0 }
 0x23d   :  { %1207 = vrot.lane.b32.xlu0 %v1160_v15, %s2610_s1 }
 0x23e   :  { %1229 = vadd.xlane.f32.xlu1 %v1228_v28 }
 0x241   :  { %v2910_v36 = vpop.xlane.xlu1 %539 }
 0x242   :  { %1235 = vadd.xlane.f32.xlu1 %v1234_v30  ;;  %v610_v23 = vrot.slane %v2910_v36, %v2939_v0 }
 0x245   :  { %v1186_v39 = vpop.permute.xlu1 %1185 }
 0x246   :  { %1232 = vadd.xlane.f32.xlu1 %v1231_v31  ;;  %v1237_v6 = vsel %vm522_vm0, %v1186_v39, 0.0 }
 0x249   :  { %v1192_v41 = vpop.permute.xlu1 %1191 }
 0x24a   :  { %1241 = vadd.xlane.f32.xlu1 %v1240_v58  ;;  %v1246_v43 = vsel %vm522_vm0, %v1192_v41, 0.0 }
 0x24d   :  { %v1190_v44 = vpop.permute.xlu1 %1189 }
 0x24e   :  { %v1243_v45 = vsel %vm522_vm0, %v1190_v44, 0.0 }
 0x25c   :  { %545 = vadd.xlane.f32.xlu0 %v544_v33 }
 0x260   :  { %560 = vadd.xlane.f32.xlu0 %v559_v34 }
 0x264   :  { %569 = vadd.xlane.f32.xlu0 %v568_v37 }
 0x268   :  { %566 = vadd.xlane.f32.xlu0 %v565_v38 }
 0x26b   :  { %v2915_v40 = vpop.xlane.xlu0 %536 }
 0x26c   :  { %1226 = vadd.xlane.f32.xlu0 %v1225_v10  ;;  %v606_v24 = vrot.slane %v2915_v40, %v2939_v0 }
 0x26e   :  { %v658_v13 = vsel %vm657_vm9, %v606_v24, %v656_v12 }
 0x26f   :  { %v2918_v19 = vpop.xlane.xlu0 %542  ;;  %v660_v28 = vsel %vm659_vm10, %v610_v23, %v658_v13 }
 0x270   :  { %1238 = vadd.xlane.f32.xlu0 %v1237_v6  ;;  %v614_v17 = vrot.slane %v2918_v19, %v2939_v0 }
 0x272   :  { %v662_v30 = vsel %vm661_vm11, %v614_v17, %v660_v28 }
 0x273   :  { %v1196_v42 = vpop.permute.xlu0 %1195 }
 0x274   :  { %1247 = vadd.xlane.f32.xlu0 %v1246_v43  ;;  %v1252_v26 = vsel %vm522_vm0, %v1196_v42, 0.0 }
 0x275   :  { %1253 = vadd.xlane.f32.xlu1 %v1252_v26 }
 0x278   :  { %1244 = vadd.xlane.f32.xlu0 %v1243_v45 }
 0x27e   :  { %v2924_v46 = vpop.xlane.xlu1 %551 }
 0x27f   :  { %v626_v35 = vrot.slane %v2924_v46, %v2939_v0 }
 0x282   :  { %v1194_v47 = vpop.permute.xlu1 %1193 }
 0x283   :  { %v1249_v48 = vsel %vm522_vm0, %v1194_v47, 0.0 }
 0x284   :  { %1250 = vadd.xlane.f32.xlu0 %v1249_v48 }
 0x286   :  { %v1202_v49 = vpop.permute.xlu1 %1201 }
 0x287   :  { %v1261_v50 = vsel %vm522_vm0, %v1202_v49, 0.0 }
 0x288   :  { %1262 = vadd.xlane.f32.xlu0 %v1261_v50 }
 0x28a   :  { %v1206_v51 = vpop.permute.xlu1 %1205 }
 0x28b   :  { %v1267_v52 = vsel %vm522_vm0, %v1206_v51, 0.0 }
 0x28c   :  { %1268 = vadd.xlane.f32.xlu0 %v1267_v52 }
 0x2a4   :  { %v2929_v53 = vpop.xlane.xlu0 %548 }
 0x2a5   :  { %v622_v31 = vrot.slane %v2929_v53, %v2939_v0 }
 0x2a7   :  { %v665_v39 = vsel %vm651_vm6, %v626_v35, %v622_v31 }
 0x2a8   :  { %v1200_v54 = vpop.permute.xlu0 %1199 }
 0x2a9   :  { %v1258_v55 = vsel %vm522_vm0, %v1200_v54, 0.0 }
 0x2aa   :  { %1259 = vadd.xlane.f32.xlu1 %v1258_v55 }
 0x2ac   :  { %v1198_v56 = vpop.permute.xlu0 %1197 }
 0x2ad   :  { %v1255_v57 = vsel %vm522_vm0, %v1198_v56, 0.0 }
 0x2ae   :  { %1256 = vadd.xlane.f32.xlu1 %v1255_v57 }
 0x2b0   :  { %v1204_v59 = vpop.permute.xlu0 %1203 }
 0x2b1   :  { %v1264_v60 = vsel %vm522_vm0, %v1204_v59, 0.0 }
 0x2b2   :  { %1265 = vadd.xlane.f32.xlu1 %v1264_v60 }
 0x2b4   :  { %v1208_v61 = vpop.permute.xlu0 %1207 }
 0x2b5   :  { %v1270_v62 = vsel %vm522_vm0, %v1208_v61, 0.0 }
 0x2b6   :  { %1271 = vadd.xlane.f32.xlu1 %v1270_v62 }
 0x2bb   :  { %v2935_v63 = vpop.xlane.xlu1 %554 }
 0x2bc   :  { %v630_v34 = vrot.slane %v2935_v63, %v2939_v0 }
 0x2be   :  { %v666_v41 = vsel %vm653_vm7, %v630_v34, %v665_v39 }
 0x2bf   :  { %v2947_v5 = vpop.xlane.xlu1 %557 }
 0x2c0   :  { %v634_v37 = vrot.slane %v2947_v5, %v2939_v0 }
 0x2c2   :  { %v667_v6 = vsel %vm655_vm8, %v634_v37, %v666_v41 }
 0x2c3   :  { %v2959_v21 = vpop.xlane.xlu1 %563 }
 0x2c4   :  { %v642_v44 = vrot.slane %v2959_v21, %v2939_v0 }
 0x2c7   :  { %v2972_v32 = vpop.xlane.xlu1 %1229 }
 0x2c8   :  { %v1296_v54 = vrot.slane %v2972_v32, %v2939_v0 }
 0x2cb   :  { %v2990_v42 = vpop.xlane.xlu1 %1235 }
 0x2cc   :  { %v1304_v62 = vrot.slane %v2990_v42, %v2939_v0 }
 0x2cf   :  { %v3003_v50 = vpop.xlane.xlu1 %1232 }
 0x2d0   :  { %v1300_v57 = vrot.slane %v3003_v50, %v2939_v0 }
 0x2d3   :  { %v3026_v7 = vpop.xlane.xlu1 %1241 }
 0x2d4   :  { %v1312_v24 = vrot.slane %v3026_v7, %v2939_v0 }
 0x2e5   :  { %v2963_v15 = vpop.xlane.xlu0 %545 }
 0x2e6   :  { %v618_v25 = vrot.slane %v2963_v15, %v2939_v0 }
 0x2e8   :  { %v664_v18 = vsel %vm663_vm12, %v618_v25, %v662_v30 }
 0x2e9   :  { %v2974_v58 = vpop.xlane.xlu0 %560  ;;  %v674_v33 = vsel %vm201_vm4, %v664_v18, 0.0 }
 0x2ea   :  { %675 = vadd.xlane.f32.xlu0 %v674_v33  ;;  %v638_v38 = vrot.slane %v2974_v58, %v2939_v0 }
 0x2ec   :  { %v668_v43 = vsel %vm657_vm9, %v638_v38, %v667_v6 }
 0x2ed   :  { %v2986_v10 = vpop.xlane.xlu0 %569  ;;  %v669_v48 = vsel %vm659_vm10, %v642_v44, %v668_v43 }
 0x2ee   :  { %v650_v47 = vrot.slane %v2986_v10, %v2939_v0 }
 0x2f1   :  { %v2995_v26 = vpop.xlane.xlu0 %566 }
 0x2f2   :  { %v646_v45 = vrot.slane %v2995_v26, %v2939_v0 }
 0x2f4   :  { %v670_v49 = vsel %vm661_vm11, %v646_v45, %v669_v48 }
 0x2f5   :  { %v3005_v51 = vpop.xlane.xlu0 %1226  ;;  %v671_v52 = vsel %vm663_vm12, %v650_v47, %v670_v49 }
 0x2f6   :  { %v1292_v55 = vrot.slane %v3005_v51, %v2939_v0  ;;  %v677_v56 = vsel %vm201_vm4, %v671_v52, 0.0 }
 0x2f7   :  { %678 = vadd.xlane.f32.xlu1 %v677_v56 }
 0x2f8   :  { %v1353_v59 = vsel %vm651_vm6, %v1296_v54, %v1292_v55 }
 0x2f9   :  { %v3016_v60 = vpop.xlane.xlu0 %1238  ;;  %v1354_v61 = vsel %vm653_vm7, %v1300_v57, %v1353_v59 }
 0x2fa   :  { %v1308_v1 = vrot.slane %v3016_v60, %v2939_v0  ;;  %v1355_v2 = vsel %vm655_vm8, %v1304_v62, %v1354_v61 }
 0x2fc   :  { %v1356_v9 = vsel %vm657_vm9, %v1308_v1, %v1355_v2 }
 0x2fd   :  { %v3024_v4 = vpop.xlane.xlu0 %1247  ;;  %v1357_v17 = vsel %vm659_vm10, %v1312_v24, %v1356_v9  ;;  %v3082_v9 = vsub.s32 3, %v2709_v20  ;;  %v3085_v24 = vsub.s32 2, %v2709_v20 }
 0x2fe   :  { %v1320_v13 = vrot.slane %v3024_v4, %v2939_v0  ;;  %v3041_v30 = vpop.xlane.xlu1 %1253 }
 0x2ff   :  { %v1328_v35 = vrot.slane %v3041_v30, %v2939_v0 }
 0x301   :  { %v3031_v11 = vpop.xlane.xlu0 %1244 }
 0x302   :  { %v1316_v12 = vrot.slane %v3031_v11, %v2939_v0 }
 0x304   :  { %v1358_v23 = vsel %vm661_vm11, %v1316_v12, %v1357_v17 }
 0x305   :  { %v1359_v25 = vsel %vm663_vm12, %v1320_v13, %v1358_v23 }
 0x306   :  { %v1369_v28 = vsel %vm201_vm4, %v1359_v25, 0.0  ;;  %v3091_v25 = vsub.s32 5, %v2709_v20 }
 0x307   :  { %1370 = vadd.xlane.f32.xlu0 %v1369_v28 }
 0x30d   :  { %v3043_v18 = vpop.xlane.xlu0 %1250 }
 0x30e   :  { %v1324_v33 = vrot.slane %v3043_v18, %v2939_v0 }
 0x310   :  { %v1360_v39 = vsel %vm651_vm6, %v1328_v35, %v1324_v33  ;;  %v3095_v33 = vsub.s32 4, %v2709_v20 }
 0x311   :  { %v3049_v34 = vpop.xlane.xlu0 %1262 }
 0x312   :  { %v1340_v6 = vrot.slane %v3049_v34, %v2939_v0 }
 0x315   :  { %v3066_v47 = vpop.xlane.xlu0 %1268 }
 0x316   :  { %v1348_v54 = vrot.slane %v3066_v47, %v2939_v0 }
 0x333   :  { %v3045_v31 = vpop.xlane.xlu1 %1259 }
 0x334   :  { %v1336_v41 = vrot.slane %v3045_v31, %v2939_v0 }
 0x337   :  { %v3053_v37 = vpop.xlane.xlu1 %1256 }
 0x338   :  { %v1332_v38 = vrot.slane %v3053_v37, %v2939_v0 }
 0x33a   :  { %v1361_v43 = vsel %vm653_vm7, %v1332_v38, %v1360_v39  ;;  %v3100_v39 = vsub.s32 6, %v2709_v20 }
 0x33b   :  { %v1362_v44 = vsel %vm655_vm8, %v1336_v41, %v1361_v43  ;;  %v3064_v45 = vpop.xlane.xlu1 %1265  ;;  %v3103_v43 = vsub.s32 7, %v2709_v20 }
 0x33c   :  { %v1344_v48 = vrot.slane %v3064_v45, %v2939_v0  ;;  %v1363_v49 = vsel %vm657_vm9, %v1340_v6, %v1362_v44 }
 0x33e   :  { %v1364_v52 = vsel %vm659_vm10, %v1344_v48, %v1363_v49 }
 0x33f   :  { %v3074_v55 = vpop.xlane.xlu1 %1271  ;;  %v1365_v57 = vsel %vm661_vm11, %v1348_v54, %v1364_v52 }
 0x340   :  { %v1352_v56 = vrot.slane %v3074_v55, %v2939_v0 }
 0x342   :  { %v1366_v59 = vsel %vm663_vm12, %v1352_v56, %v1365_v57 }
 0x343   :  { %v1372_v61 = vsel %vm201_vm4, %v1366_v59, 0.0 }
 0x344   :  { %1373 = vadd.xlane.f32.xlu1 %v1372_v61 }
 0x373   :  { %v676_v62 = vpop.xlane.xlu0 %675 }
 0x374   :  { %v681_v1 = vmul.f32 0.125, %v676_v62 }
 0x376   :  { %v683_v2 = vand.u32 2147483647, %v681_v1 }
 0x378   :  { %v685_v12 = vadd.f32 1e-10, %v683_v2 }
 0x37a   :  { %v692_v13 = vrot.slane %v685_v12, %v2811_v3  ;;  %v696_v17 = vrot.slane %v685_v12, %v2717_v22  ;;  %v704_v23 = vrot.slane %v685_v12, %v3082_v9  ;;  %v700_v28 = vrot.slane %v685_v12, %v3085_v24 }
 0x37b   :  { %v712_v35 = vrot.slane %v685_v12, %v3091_v25  ;;  %v708_v38 = vrot.slane %v685_v12, %v3095_v33  ;;  %v716_v48 = vrot.slane %v685_v12, %v3100_v39  ;;  %v720_v52 = vrot.slane %v685_v12, %v3103_v43 }
 0x37c   :  { %2460 = vrcp.f32 %v692_v13 }
 0x37d   :  { %2462 = vrcp.f32 %v696_v17 }
 0x37e   :  { %2464 = vrcp.f32 %v704_v23 }
 0x37f   :  { %2466 = vrcp.f32 %v700_v28 }
 0x380   :  { %v679_v41 = vpop.xlane.xlu1 %678  ;;  %2468 = vrcp.f32 %v712_v35 }
 0x381   :  { %v682_v6 = vmul.f32 0.125, %v679_v41  ;;  %2470 = vrcp.f32 %v708_v38 }
 0x382   :  { %2472 = vrcp.f32 %v716_v48 }
 0x383   :  { %v684_v44 = vand.u32 2147483647, %v682_v6 }
 0x385   :  { %v686_v49 = vadd.f32 1e-10, %v684_v44 }
 0x387   :  { %v728_v54 = vrot.slane %v686_v49, %v2717_v22  ;;  %v732_v56 = vrot.slane %v686_v49, %v3085_v24  ;;  %v724_v62 = vrot.slane %v686_v49, %v2811_v3  ;;  %v736_v13 = vrot.slane %v686_v49, %v3082_v9 }
 0x388   :  { %v740_v23 = vrot.slane %v686_v49, %v3095_v33  ;;  %v744_v35 = vrot.slane %v686_v49, %v3091_v25  ;;  %v748_v44 = vrot.slane %v686_v49, %v3100_v39 }
 0x389   :  { %v2461_v57 = vpop.eup %2460  ;;  %2474 = vrcp.f32 %v728_v54 }
 0x38a   :  { %v2463_v59 = vpop.eup %2462  ;;  %v770_v61 = vmul.f32 %v2461_v57, %v2889_v16  ;;  %2476 = vrcp.f32 %v720_v52 }
 0x38b   :  { %v2465_v1 = vpop.eup %2464  ;;  %v772_v2 = vmul.f32 %v2463_v59, %v2887_v14  ;;  %2478 = vrcp.f32 %v732_v56  ;;  %v752_v56 = vrot.slane %v686_v49, %v3103_v43 }
 0x38c   :  { %v2467_v12 = vpop.eup %2466  ;;  %820 = vperm.xlu0 %2458, %v770_v61   ;;  %v776_v17 = vmul.f32 %v2465_v1, %v2896_v27  ;;  %2480 = vrcp.f32 %v724_v62 }
 0x38d   :  { %823 = vperm.xlu1 %2459, %v772_v2   ;;  %v2469_v28 = vpop.eup %2468  ;;  %v774_v16 = vmul.f32 %v2467_v12, %v2900_v29  ;;  %2482 = vrcp.f32 %v736_v13 }
 0x38e   :  { %v2471_v38 = vpop.eup %2470  ;;  %v780_v6 = vmul.f32 %v2469_v28, %v2910_v36  ;;  %2484 = vrcp.f32 %v740_v23 }
 0x38f   :  { %v778_v48 = vmul.f32 %v2471_v38, %v2915_v40  ;;  %2486 = vrcp.f32 %v744_v35  ;;  %v2473_v52 = vpop.eup %2472 }
 0x390   :  { %829 = vperm.xlu0 %2458, %v776_v17   ;;  %v1371_v14 = vpop.xlane.xlu0 %1370  ;;  %2488 = vrcp.f32 %v748_v44  ;;  %v782_v59 = vmul.f32 %v2473_v52, %v2918_v19 }
 0x391   :  { %v1375_v41 = vmul.f32 0.125, %v1371_v14  ;;  %826 = vperm.xlu1 %2459, %v774_v16  }
 0x393   :  { %v1377_v27 = vand.u32 2147483647, %v1375_v41 }
 0x394   :  { %835 = vperm.xlu0 %2458, %v780_v6  }
 0x395   :  { %v1379_v29 = vadd.f32 1e-10, %v1377_v27  ;;  %832 = vperm.xlu1 %2459, %v778_v48  }
 0x396   :  { %v2475_v54 = vpop.eup %2474 }
 0x397   :  { %v2477_v57 = vpop.eup %2476  ;;  %v788_v36 = vmul.f32 %v2475_v54, %v2924_v46  ;;  %v1390_v61 = vrot.slane %v1379_v29, %v2717_v22  ;;  %v1394_v62 = vrot.slane %v1379_v29, %v3085_v24  ;;  %v1386_v40 = vrot.slane %v1379_v29, %v2811_v3 }
 0x398   :  { %v2479_v1 = vpop.eup %2478  ;;  %v784_v13 = vmul.f32 %v2477_v57, %v2963_v15  ;;  %v1398_v19 = vrot.slane %v1379_v29, %v3082_v9  ;;  %v1402_v12 = vrot.slane %v1379_v29, %v3095_v33  ;;  %v1406_v16 = vrot.slane %v1379_v29, %v3091_v25 }
 0x399   :  { %838 = vperm.xlu1 %2459, %v782_v59   ;;  %847 = vperm.xlu0 %2458, %v788_v36   ;;  %2490 = vrcp.f32 %v1390_v61  ;;  %v2481_v2 = vpop.eup %2480  ;;  %v790_v49 = vmul.f32 %v2479_v1, %v2935_v63  ;;  %v1410_v14 = vrot.slane %v1379_v29, %v3100_v39  ;;  %v1414_v44 = vrot.slane %v1379_v29, %v3103_v43  ;;  %v3169_v61 = vld [vmem:[%s3433_s3 + $0x8] sm:$0xff] }
 0x39a   :  { %2492 = vrcp.f32 %v752_v56  ;;  %v2483_v46 = vpop.eup %2482  ;;  %v786_v23 = vmul.f32 %v2481_v2, %v2929_v53 }
 0x39b   :  { %2494 = vrcp.f32 %v1394_v62  ;;  %v2485_v17 = vpop.eup %2484  ;;  %v792_v28 = vmul.f32 %v2483_v46, %v2947_v5 }
 0x39c   :  { %2496 = vrcp.f32 %v1386_v40  ;;  %v2487_v15 = vpop.eup %2486  ;;  %v794_v35 = vmul.f32 %v2485_v17, %v2974_v58 }
 0x39d   :  { %841 = vperm.xlu1 %2459, %v784_v13   ;;  %850 = vperm.xlu0 %2458, %v790_v49   ;;  %2498 = vrcp.f32 %v1398_v19  ;;  %v2489_v63 = vpop.eup %2488  ;;  %v796_v38 = vmul.f32 %v2487_v15, %v2959_v21 }
 0x39e   :  { %2500 = vrcp.f32 %v1402_v12  ;;  %v798_v5 = vmul.f32 %v2489_v63, %v2995_v26 }
 0x39f   :  { %2502 = vrcp.f32 %v1406_v16 }
 0x3a0   :  { %2504 = vrcp.f32 %v1410_v14 }
 0x3a1   :  { %844 = vperm.xlu1 %2459, %v786_v23   ;;  %853 = vperm.xlu0 %2458, %v792_v28   ;;  %2506 = vrcp.f32 %v1414_v44 }
 0x3a5   :  { %856 = vperm.xlu1 %2459, %v794_v35   ;;  %859 = vperm.xlu0 %2458, %v796_v38  }
 0x3a6   :  { %v2491_v53 = vpop.eup %2490 }
 0x3a7   :  { %v2493_v41 = vpop.eup %2492  ;;  %v1466_v6 = vmul.f32 %v2491_v53, %v2972_v32 }
 0x3a8   :  { %v2495_v27 = vpop.eup %2494  ;;  %v800_v21 = vmul.f32 %v2493_v41, %v2986_v10  ;;  %v414_v10 = vld [vmem:[%s3434_s4 + $0x18] sm:$0xff] }
 0x3a9   :  { %862 = vperm.xlu1 %2459, %v798_v5   ;;  %1515 = vperm.xlu0 %2458, %v1466_v6   ;;  %v2497_v58 = vpop.eup %2496  ;;  %v1468_v48 = vmul.f32 %v2495_v27, %v3003_v50 }
 0x3aa   :  { %v2499_v52 = vpop.eup %2498  ;;  %v1464_v26 = vmul.f32 %v2497_v58, %v3005_v51  ;;  %2381 = vmatprep.subr.mxu1 %v414_v10  ;;  %v412_v51 = vld [vmem:[%s3434_s4 + $0x8] sm:$0xff] }
 0x3ab   :  { %v2501_v54 = vpop.eup %2500  ;;  %v1470_v32 = vmul.f32 %v2499_v52, %v2990_v42  ;;  %2382 = vmatpush3.msra.mxu1 %v414_v10  ;;  %v413_v42 = vld [vmem:[%s3434_s4 + $0x10] sm:$0xff] }
 0x3ac   :  { %v2503_v56 = vpop.eup %2502  ;;  %v1472_v29 = vmul.f32 %v2501_v54, %v3016_v60  ;;  %2383 = vmatprep.subr.mxu1 %v413_v42 }
 0x3ad   :  { %865 = vperm.xlu1 %2459, %v800_v21   ;;  %1518 = vperm.xlu0 %2458, %v1468_v48   ;;  %v1474_v57 = vmul.f32 %v2503_v56, %v3026_v7  ;;  %v2505_v59 = vpop.eup %2504  ;;  %v411_v7 = vld [vmem:[%s3434_s4] sm:$0xff] }
 0x3ae   :  { %v1476_v50 = vmul.f32 %v2505_v59, %v3031_v11  ;;  %v2507_v60 = vpop.eup %2506  ;;  %2384 = vmatpush3.msra.mxu1 %v413_v42  ;;  %v3161_v11 = vld [vmem:[%s3433_s3] sm:$0xff] }
 0x3af   :  { %2385 = vmatprep.subr.mxu1 %v412_v51  ;;  %2389 = vmatprep.mubr.msk.f32.mxu1 %vm54_vm13, %v3161_v11  ;;  %v1478_v36 = vmul.f32 %v2507_v60, %v3024_v4  ;;  %v30_v56 = vld [vmem:[%s3432_s2] sm:$0xff] }
 0x3b0   :  { %2386 = vmatpush3.msra.mxu1 %v412_v51  ;;  %vm801_vm14 = vcmp.ne.f32.partialorder %v30_v56, 0.0 }
 0x3b1   :  { %1512 = vperm.xlu1 %2459, %v1464_v26   ;;  %1521 = vperm.xlu0 %2458, %v1470_v32  }
 0x3b2   :  { %2387 = vmatprep.subr.mxu1 %v411_v7 }
 0x3b3   :  { %2388 = vmatpush3.msra.mxu1 %v411_v7 }
 0x3b4   :  { %2390 = vmatmul.mubr.msk.f32.vlgmr.msra.gmra.mxu1 %vm54_vm13, %v3169_v61  ;;  %2392 = vmatprep.subr.mxu1 %v2608_v8 }
 0x3b5   :  { %1524 = vperm.xlu1 %2459, %v1472_v29   ;;  %1527 = vperm.xlu0 %2458, %v1474_v57  }
 0x3b6   :  { %2394 = vmatprep.mubr.msk.f32.mxu1 %vm2611_vm1, %v2608_v8 }
 0x3b9   :  { %1530 = vperm.xlu1 %2459, %v1476_v50  }
 0x3bd   :  { %1533 = vperm.xlu1 %2459, %v1478_v36  }
 0x3cd   :  { %v1374_v62 = vpop.xlane.xlu1 %1373 }
 0x3ce   :  { %v1376_v1 = vmul.f32 0.125, %v1374_v62 }
 0x3d0   :  { %v1378_v40 = vand.u32 2147483647, %v1376_v1 }
 0x3d2   :  { %v1380_v2 = vadd.f32 1e-10, %v1378_v40 }
 0x3d4   :  { %v1422_v4 = vrot.slane %v1380_v2, %v2717_v22  ;;  %v1418_v13 = vrot.slane %v1380_v2, %v2811_v3  ;;  %v1426_v49 = vrot.slane %v1380_v2, %v3085_v24  ;;  %v1434_v19 = vrot.slane %v1380_v2, %v3095_v33 }
 0x3d5   :  { %v1430_v46 = vrot.slane %v1380_v2, %v3082_v9  ;;  %v1442_v12 = vrot.slane %v1380_v2, %v3100_v39  ;;  %v1438_v17 = vrot.slane %v1380_v2, %v3091_v25  ;;  %v1446_v22 = vrot.slane %v1380_v2, %v3103_v43 }
 0x3d6   :  { %2508 = vrcp.f32 %v1422_v4 }
 0x3d7   :  { %2510 = vrcp.f32 %v1418_v13 }
 0x3d8   :  { %2512 = vrcp.f32 %v1426_v49 }
 0x3d9   :  { %2514 = vrcp.f32 %v1434_v19 }
 0x3da   :  { %2516 = vrcp.f32 %v1430_v46 }
 0x3db   :  { %2518 = vrcp.f32 %v1442_v12 }
 0x3dc   :  { %2520 = vrcp.f32 %v1438_v17 }
 0x3dd   :  { %2522 = vrcp.f32 %v1446_v22 }
 0x3e3   :  { %v2509_v23 = vpop.eup %2508 }
 0x3e4   :  { %v2511_v28 = vpop.eup %2510  ;;  %v1482_v24 = vmul.f32 %v2509_v23, %v3041_v30 }
 0x3e5   :  { %v2513_v33 = vpop.eup %2512  ;;  %v1480_v16 = vmul.f32 %v2511_v28, %v3043_v18 }
 0x3e6   :  { %v2515_v15 = vpop.eup %2514  ;;  %1539 = vperm.xlu0 %2458, %v1482_v24   ;;  %v1484_v9 = vmul.f32 %v2513_v33, %v3053_v37  ;;  %v31_v33 = vld [vmem:[%s3432_s2 + $0x8] sm:$0xff] }
 0x3e7   :  { %1536 = vperm.xlu1 %2459, %v1480_v16   ;;  %v2517_v39 = vpop.eup %2516  ;;  %v1488_v25 = vmul.f32 %v2515_v15, %v3049_v34  ;;  %vm802_vm15 = vcmp.ne.f32.partialorder %v31_v33, 0.0 }
 0x3e8   :  { %v2519_v63 = vpop.eup %2518  ;;  %v1486_v43 = vmul.f32 %v2517_v39, %v3045_v31 }
 0x3e9   :  { %v2521_v35 = vpop.eup %2520  ;;  %v1492_v30 = vmul.f32 %v2519_v63, %v3066_v47 }
 0x3ea   :  { %1542 = vperm.xlu0 %2458, %v1484_v9   ;;  %v1490_v18 = vmul.f32 %v2521_v35, %v3064_v45  ;;  %v2523_v38 = vpop.eup %2522 }
 0x3eb   :  { %1548 = vperm.xlu1 %2459, %v1488_v25   ;;  %v1494_v14 = vmul.f32 %v2523_v38, %v3074_v55 }
 0x3ee   :  { %1545 = vperm.xlu0 %2458, %v1486_v43  }
 0x3ef   :  { %1554 = vperm.xlu1 %2459, %v1492_v30  }
 0x3f2   :  { %1551 = vperm.xlu0 %2458, %v1490_v18  }
 0x3f6   :  { %1557 = vperm.xlu0 %2458, %v1494_v14  }
 0x407   :  { %v821_v37 = vpop.permute.xlu0 %820 }
 0x408   :  { %v824_v53 = vpop.permute.xlu1 %823  ;;  %v870_v5 = vrot.slane %v821_v37, %v2939_v0 }
 0x409   :  { %v874_v31 = vrot.slane %v824_v53, %v2939_v0 }
 0x40b   :  { %v830_v34 = vpop.permute.xlu0 %829  ;;  %v931_v27 = vsel %vm651_vm6, %v874_v31, %v870_v5 }
 0x40c   :  { %v827_v41 = vpop.permute.xlu1 %826  ;;  %v882_v45 = vrot.slane %v830_v34, %v2939_v0 }
 0x40d   :  { %v878_v6 = vrot.slane %v827_v41, %v2939_v0 }
 0x40f   :  { %v836_v47 = vpop.permute.xlu0 %835  ;;  %v932_v58 = vsel %vm653_vm7, %v878_v6, %v931_v27 }
 0x410   :  { %v833_v44 = vpop.permute.xlu1 %832  ;;  %v890_v52 = vrot.slane %v836_v47, %v2939_v0  ;;  %v933_v54 = vsel %vm655_vm8, %v882_v45, %v932_v58 }
 0x411   :  { %v886_v55 = vrot.slane %v833_v44, %v2939_v0 }
 0x413   :  { %v934_v26 = vsel %vm657_vm9, %v886_v55, %v933_v54 }
 0x414   :  { %v839_v21 = vpop.permute.xlu1 %838  ;;  %v848_v48 = vpop.permute.xlu0 %847  ;;  %v935_v59 = vsel %vm659_vm10, %v890_v52, %v934_v26 }
 0x415   :  { %v894_v32 = vrot.slane %v839_v21, %v2939_v0  ;;  %v906_v36 = vrot.slane %v848_v48, %v2939_v0 }
 0x417   :  { %v936_v50 = vsel %vm661_vm11, %v894_v32, %v935_v59 }
 0x418   :  { %v842_v29 = vpop.permute.xlu1 %841  ;;  %v851_v57 = vpop.permute.xlu0 %850 }
 0x419   :  { %v898_v10 = vrot.slane %v842_v29, %v2939_v0  ;;  %v910_v40 = vrot.slane %v851_v57, %v2939_v0 }
 0x41b   :  { %v937_v42 = vsel %vm663_vm12, %v898_v10, %v936_v50 }
 0x41c   :  { %v845_v51 = vpop.permute.xlu1 %844  ;;  %v854_v60 = vpop.permute.xlu0 %853  ;;  %v3209_v7 = vsel %vm801_vm14, %v937_v42, -9e+15 }
 0x41d   :  { %v902_v62 = vrot.slane %v845_v51, %v2939_v0  ;;  %v949_v1 = vsel %vm201_vm4, %v3209_v7, -inf  ;;  %v914_v4 = vrot.slane %v854_v60, %v2939_v0 }
 0x41e   :  { %950 = vmax.xlane.f32.xlu1 %v949_v1 }
 0x41f   :  { %v938_v2 = vsel %vm651_vm6, %v906_v36, %v902_v62 }
 0x420   :  { %v939_v13 = vsel %vm653_vm7, %v910_v40, %v938_v2  ;;  %v857_v49 = vpop.permute.xlu1 %856  ;;  %v860_v19 = vpop.permute.xlu0 %859 }
 0x421   :  { %v918_v46 = vrot.slane %v857_v49, %v2939_v0  ;;  %v940_v12 = vsel %vm655_vm8, %v914_v4, %v939_v13  ;;  %v922_v23 = vrot.slane %v860_v19, %v2939_v0 }
 0x423   :  { %v941_v28 = vsel %vm657_vm9, %v918_v46, %v940_v12 }
 0x424   :  { %v863_v17 = vpop.permute.xlu1 %862  ;;  %v1516_v22 = vpop.permute.xlu0 %1515  ;;  %v942_v9 = vsel %vm659_vm10, %v922_v23, %v941_v28 }
 0x425   :  { %v926_v24 = vrot.slane %v863_v17, %v2939_v0  ;;  %v1566_v18 = vrot.slane %v1516_v22, %v2939_v0 }
 0x427   :  { %v943_v25 = vsel %vm661_vm11, %v926_v24, %v942_v9 }
 0x428   :  { %v866_v16 = vpop.permute.xlu1 %865  ;;  %v1519_v15 = vpop.permute.xlu0 %1518 }
 0x429   :  { %v930_v39 = vrot.slane %v866_v16, %v2939_v0  ;;  %v1570_v37 = vrot.slane %v1519_v15, %v2939_v0  ;;  %v2297_v15 = vld [vmem:[%s3434_s4 + $0x70] ss:$0 sm:$0xff] }
 0x42b   :  { %v944_v63 = vsel %vm663_vm12, %v930_v39, %v943_v25 }
 0x42c   :  { %v1513_v43 = vpop.permute.xlu1 %1512  ;;  %v1522_v35 = vpop.permute.xlu0 %1521  ;;  %v3232_v30 = vsel %vm802_vm15, %v944_v63, -9e+15 }
 0x42d   :  { %v1562_v38 = vrot.slane %v1513_v43, %v2939_v0  ;;  %v952_v14 = vsel %vm201_vm4, %v3232_v30, -inf  ;;  %v1574_v34 = vrot.slane %v1522_v35, %v2939_v0 }
 0x42e   :  { %953 = vmax.xlane.f32.xlu0 %v952_v14 }
 0x42f   :  { %v1623_v53 = vsel %vm651_vm6, %v1566_v18, %v1562_v38 }
 0x430   :  { %v1624_v41 = vsel %vm653_vm7, %v1570_v37, %v1623_v53  ;;  %v1525_v5 = vpop.permute.xlu1 %1524  ;;  %v1528_v6 = vpop.permute.xlu0 %1527 }
 0x431   :  { %v1578_v31 = vrot.slane %v1525_v5, %v2939_v0  ;;  %v1625_v47 = vsel %vm655_vm8, %v1574_v34, %v1624_v41  ;;  %v1582_v27 = vrot.slane %v1528_v6, %v2939_v0 }
 0x433   :  { %v1626_v45 = vsel %vm657_vm9, %v1578_v31, %v1625_v47 }
 0x434   :  { %v1531_v44 = vpop.permute.xlu1 %1530  ;;  %v1627_v21 = vsel %vm659_vm10, %v1582_v27, %v1626_v45 }
 0x435   :  { %v1586_v58 = vrot.slane %v1531_v44, %v2939_v0 }
 0x437   :  { %v1628_v52 = vsel %vm661_vm11, %v1586_v58, %v1627_v21 }
 0x438   :  { %v1534_v55 = vpop.permute.xlu1 %1533 }
 0x439   :  { %v1590_v48 = vrot.slane %v1534_v55, %v2939_v0 }
 0x43b   :  { %v1629_v54 = vsel %vm663_vm12, %v1590_v48, %v1628_v52 }
 0x43c   :  { %v1639_v26 = vsel %vm801_vm14, %v1629_v54, -9e+15 }
 0x43d   :  { %v1641_v32 = vsel %vm201_vm4, %v1639_v26, -inf }
 0x43e   :  { %1642 = vmax.xlane.f32.xlu0 %v1641_v32 }
 0x461   :  { %v1540_v29 = vpop.permute.xlu0 %1539 }
 0x462   :  { %v1537_v57 = vpop.permute.xlu1 %1536  ;;  %v1598_v10 = vrot.slane %v1540_v29, %v2939_v0 }
 0x463   :  { %v1594_v50 = vrot.slane %v1537_v57, %v2939_v0 }
 0x465   :  { %v1543_v59 = vpop.permute.xlu0 %1542  ;;  %v1630_v36 = vsel %vm651_vm6, %v1598_v10, %v1594_v50 }
 0x466   :  { %v1602_v42 = vrot.slane %v1543_v59, %v2939_v0  ;;  %v1549_v51 = vpop.permute.xlu1 %1548 }
 0x467   :  { %v1610_v40 = vrot.slane %v1549_v51, %v2939_v0  ;;  %v1850_v51 = vld [vmem:[%s3434_s4 + $0x30] sm:$0xff] }
 0x468   :  { %v1631_v56 = vsel %vm653_vm7, %v1602_v42, %v1630_v36  ;;  %v1851_v42 = vld [vmem:[%s3434_s4 + $0x38] sm:$0xff]  ;;  %v1848_v36 = vld [vmem:[%s3434_s4 + $0x20] sm:$0xff] }
 0x469   :  { %v1546_v60 = vpop.permute.xlu0 %1545 }
 0x46a   :  { %v1606_v62 = vrot.slane %v1546_v60, %v2939_v0  ;;  %v1555_v4 = vpop.permute.xlu1 %1554  ;;  %v1849_v60 = vld [vmem:[%s3434_s4 + $0x28] sm:$0xff] }
 0x46b   :  { %v1618_v46 = vrot.slane %v1555_v4, %v2939_v0 }
 0x46c   :  { %v1632_v1 = vsel %vm655_vm8, %v1606_v62, %v1631_v56  ;;  %v1934_v62 = vld [vmem:[%s3434_s4 + $0x68] sm:$0xff]  ;;  %v1933_v56 = vld [vmem:[%s3434_s4 + $0x60] sm:$0xff] }
 0x46d   :  { %v1552_v2 = vpop.permute.xlu0 %1551  ;;  %v1633_v49 = vsel %vm657_vm9, %v1610_v40, %v1632_v1  ;;  %v1932_v1 = vld [vmem:[%s3434_s4 + $0x58] sm:$0xff]  ;;  %v1931_v40 = vld [vmem:[%s3434_s4 + $0x50] sm:$0xff]  ;;  %2424 = vmatpush3.msra.mxu0 %v1934_v62  ;;  %vm1846_vm9 = vcmask 1041408  }
 0x46e   :  { %v1614_v13 = vrot.slane %v1552_v2, %v2939_v0  ;;  %2425 = vmatprep.subr.mxu0 %v2608_v8 }
 0x46f   :  { %2426 = vmatpush3.msra.mxu0 %v1933_v56 }
 0x470   :  { %v1634_v19 = vsel %vm659_vm10, %v1614_v13, %v1633_v49  ;;  %2427 = vmatprep.subr.mxu0 %v2608_v8 }
 0x471   :  { %v1558_v12 = vpop.permute.xlu0 %1557  ;;  %v1635_v22 = vsel %vm661_vm11, %v1618_v46, %v1634_v19  ;;  %2428 = vmatpush3.msra.mxu0 %v1932_v1 }
 0x472   :  { %v1622_v17 = vrot.slane %v1558_v12, %v2939_v0  ;;  %2429 = vmatprep.subr.mxu0 %v2608_v8  ;;  %v39_v12 = vstv %s2263_s21 }
 0x473   :  { %2430 = vmatpush3.msra.mxu0 %v1931_v40 }
 0x474   :  { %v1636_v23 = vsel %vm663_vm12, %v1622_v17, %v1635_v22  ;;  %v2391_v16 = vpop.f32.mrf.mxu1  ;;  %v41_v17 = vstv %s2264_s22  ;;  %v35_v22 = vstv %s34_s23 }
 0x475   :  { %v1640_v28 = vsel %vm802_vm15, %v1636_v23, -9e+15  ;;  %v498_v9 = vadd.f32 %v2391_v16, %v2297_v15  ;;  %v37_v23 = vstv %s2262_s24  ;;  %vm45_vm2 = vcmp.le.s32.totalorder %v2709_v20, %v41_v17 }
 0x476   :  { %v1644_v24 = vsel %vm201_vm4, %v1640_v28, -inf  ;;  %v492_v39 = vpop.f32.mrf.mxu1  ;;  %vm42_vm3 = vcmp.ge.s32.totalorder %v2709_v20, %v35_v22  ;;  %vm44_vm5 = vcmp.le.s32.totalorder %v2709_v20, %v37_v23 }
 0x477   :  { %1645 = vmax.xlane.f32.xlu1 %v1644_v24  ;;  %v493_v25 = vadd.f32 %v2297_v15, %v492_v39  ;;  %vm3351_vm7 = vmand %vm42_vm3, %vm44_vm5 }
 0x479   :  { %2393 = vmatpush3.msra.mxu1 %v493_v25 }
 0x47a   :  { %2397 = vmatprep.subr.mxu1 %v2608_v8 }
 0x4a7   :  { %v951_v0 = vpop.xlane.xlu1 %950 }
 0x4a8   :  { %v955_v63 = vsub.f32 %v3209_v7, %v951_v0 }
 0x4aa   :  { %v957_v43 = vmul.f32 1.442695, %v955_v63 }
 0x4ac   :  { %2524 = vpow2.f32 %v957_v43 }
 0x4b7   :  { %v954_v33 = vpop.xlane.xlu0 %953 }
 0x4b8   :  { %v956_v35 = vsub.f32 %v3232_v30, %v954_v33 }
 0x4b9   :  { %v2525_v18 = vpop.eup %2524 }
 0x4ba   :  { %v959_v38 = vmul.f32 1.442695, %v956_v35  ;;  %v961_v14 = vsel %vm201_vm4, %v2525_v18, 0.0 }
 0x4bb   :  { %962 = vadd.xlane.f32.xlu0 %v961_v14 }
 0x4bc   :  { %2526 = vpow2.f32 %v959_v38 }
 0x4c7   :  { %v1643_v37 = vpop.xlane.xlu0 %1642 }
 0x4c8   :  { %v1647_v53 = vsub.f32 %v1639_v26, %v1643_v37 }
 0x4c9   :  { %v2527_v34 = vpop.eup %2526 }
 0x4ca   :  { %v1649_v41 = vmul.f32 1.442695, %v1647_v53  ;;  %v964_v5 = vsel %vm201_vm4, %v2527_v34, 0.0 }
 0x4cb   :  { %965 = vadd.xlane.f32.xlu1 %v964_v5 }
 0x4cc   :  { %2528 = vpow2.f32 %v1649_v41 }
 0x4d9   :  { %v2529_v7 = vpop.eup %2528 }
 0x4da   :  { %v1653_v30 = vsel %vm201_vm4, %v2529_v7, 0.0 }
 0x4db   :  { %1654 = vadd.xlane.f32.xlu0 %v1653_v30 }
 0x4f1   :  { %1664 = vrot.lane.b32.xlu0 %v493_v25, %s2612_s0 }
 0x4f5   :  { %2019 = vrot.lane.b32.xlu0 %v1933_v56, %s2613_s16 }
 0x4f9   :  { %2015 = vrot.lane.b32.xlu0 %v1931_v40, %s2613_s16 }
 0x500   :  { %v1646_v31 = vpop.xlane.xlu1 %1645 }
 0x501   :  { %v1648_v6 = vsub.f32 %v1640_v28, %v1646_v31 }
 0x503   :  { %v1651_v47 = vmul.f32 1.442695, %v1648_v6 }
 0x505   :  { %2530 = vpow2.f32 %v1651_v47 }
 0x512   :  { %v2531_v44 = vpop.eup %2530 }
 0x513   :  { %v1656_v27 = vsel %vm201_vm4, %v2531_v44, 0.0 }
 0x514   :  { %1657 = vadd.xlane.f32.xlu1 %v1656_v27 }
 0x525   :  { %1741 = vrot.lane.b32.xlu1 %v498_v9, %s2612_s0 }
 0x529   :  { %2021 = vrot.lane.b32.xlu1 %v1934_v62, %s2613_s16 }
 0x52d   :  { %2017 = vrot.lane.b32.xlu1 %v1932_v1, %s2613_s16 }
 0x544   :  { %v963_v45 = vpop.xlane.xlu0 %962 }
 0x545   :  { %2532 = vrcp.f32 %v963_v45 }
 0x552   :  { %v2533_v58 = vpop.eup %2532 }
 0x553   :  { %v969_v55 = vmul.f32 %v2533_v58, %v2525_v18 }
 0x554   :  { %v966_v21 = vpop.xlane.xlu1 %965 }
 0x555   :  { %2534 = vrcp.f32 %v966_v21  ;;  %2395 = vmatmul.mubr.msk.f32.vlgmr.msra.gmra.mxu1 %vm201_vm4, %v969_v55  ;;  %1135 = vst.msk [vmem:[#allocation6] sm:$0xff] %vm201_vm4, %v969_v55 }
 0x556   :  { %2398 = vmatpush3.msra.mxu1 %v498_v9  ;;  %2399 = vmatprep.mubr.msk.f32.mxu1 %vm2611_vm1, %v2608_v8 }
 0x557   :  { %2402 = vmatprep.subr.mxu1 %v2608_v8 }
 0x562   :  { %v2535_v48 = vpop.eup %2534 }
 0x563   :  { %v970_v52 = vmul.f32 %v2535_v48, %v2527_v34 }
 0x564   :  { %v1655_v54 = vpop.xlane.xlu0 %1654 }
 0x565   :  { %2536 = vrcp.f32 %v1655_v54  ;;  %2400 = vmatmul.mubr.msk.f32.vlgmr.msra.gmra.mxu1 %vm201_vm4, %v970_v52  ;;  %1136 = vst.msk [vmem:[#allocation6 + $0x8] sm:$0xff] %vm201_vm4, %v970_v52 }
 0x566   :  { %2404 = vmatprep.mubr.msk.f32.mxu1 %vm2611_vm1, %v2608_v8 }
 0x568   :  { %v1665_v26 = vpop.permute.xlu0 %1664 }
 0x569   :  { %2403 = vmatpush3.msra.mxu1 %v1665_v26 }
 0x56a   :  { %2407 = vmatprep.subr.mxu1 %v2608_v8 }
 0x572   :  { %v2537_v32 = vpop.eup %2536 }
 0x573   :  { %v1661_v29 = vmul.f32 %v2537_v32, %v2529_v7 }
 0x575   :  { %2405 = vmatmul.mubr.msk.f32.vlgmr.msra.gmra.mxu1 %vm201_vm4, %v1661_v29  ;;  %1836 = vst.msk [vmem:[#allocation6 + $0x10] sm:$0xff] %vm201_vm4, %v1661_v29 }
 0x576   :  { %2409 = vmatprep.mubr.msk.f32.mxu1 %vm2611_vm1, %v2608_v8 }
 0x59d   :  { %v1658_v57 = vpop.xlane.xlu1 %1657 }
 0x59e   :  { %2538 = vrcp.f32 %v1658_v57 }
 0x5a1   :  { %v1742_v59 = vpop.permute.xlu1 %1741 }
 0x5a2   :  { %2408 = vmatpush3.msra.mxu1 %v1742_v59 }
 0x5a3   :  { %2412 = vmatprep.subr.mxu1 %v2608_v8 }
 0x5ab   :  { %v2539_v10 = vpop.eup %2538 }
 0x5ac   :  { %v1662_v50 = vmul.f32 %v2539_v10, %v2531_v44 }
 0x5ae   :  { %2410 = vmatmul.mubr.msk.f32.vlgmr.msra.gmra.mxu1 %vm201_vm4, %v1662_v50  ;;  %1837 = vst.msk [vmem:[#allocation6 + $0x18] sm:$0xff] %vm201_vm4, %v1662_v50  ;;  %vm43_vm4 = vcmp.ge.s32.totalorder %v2709_v20, %v39_v12 }
 0x5af   :  { %2420 = vmatprep.mubr.msk.f32.mxu1 %vm2611_vm1, %v2608_v8  ;;  %2413 = vmatpush3.msra.mxu1 %v1851_v42  ;;  %vm3345_vm0 = vmand %vm43_vm4, %vm45_vm2 }
 0x5b0   :  { %2414 = vmatprep.subr.mxu1 %v2608_v8 }
 0x5b1   :  { %2415 = vmatpush3.msra.mxu1 %v1850_v51 }
 0x5b2   :  { %2416 = vmatprep.subr.mxu1 %v2608_v8 }
 0x5b3   :  { %2417 = vmatpush3.msra.mxu1 %v1849_v60  ;;  %v52_v60 = vsel %vm3351_vm7, %v3161_v11, 0.0 }
 0x5b4   :  { %2418 = vmatprep.subr.mxu1 %v2608_v8  ;;  %v55_v62 = vsel %vm54_vm13, %v52_v60, -inf }
 0x5b5   :  { %2419 = vmatpush3.msra.mxu1 %v1848_v36  ;;  %v53_v36 = vsel %vm3345_vm0, %v3169_v61, 0.0  ;;  %v56_v1 = vrot.slane %v55_v62, 4 }
 0x5b6   :  { %2434 = vmatprep.subr.mxu1 %v2608_v8  ;;  %v62_v56 = vsel %vm54_vm13, %v53_v36, -inf }
 0x5b7   :  { %v63_v40 = vrot.slane %v62_v56, 4 }
 0x615   :  { %v3334_v2 = vpop.f32.mrf.mxu1 }
 0x616   :  { %v1117_v16 = vmax.f32 %v3334_v2, 0.0 }
 0x617   :  { %v2396_v4 = vpop.f32.mrf.mxu1 }
 0x618   :  { %v1119_v25 = vsel %vm3351_vm7, %v1117_v16, 0.0  ;;  %v57_v4 = vmax.f32 %v55_v62, %v56_v1 }
 0x619   :  { %v1121_v43 = vsel %vm54_vm13, %v1119_v25, -inf  ;;  %v2022_v25 = vpop.permute.xlu1 %2021 }
 0x61a   :  { %v1122_v18 = vrot.slane %v1121_v43, 4 }
 0x61c   :  { %v1123_v37 = vmax.f32 %v1121_v43, %v1122_v18  ;;  %v2304_v43 = vld [vmem:[%s3434_s4 + $0x78] ss:$0 sm:$0xff] }
 0x61d   :  { %v2018_v24 = vpop.permute.xlu1 %2017 }
 0x61e   :  { %v1124_v30 = vrot.slane %v1123_v37, 2 }
 0x620   :  { %v1125_v45 = vmax.f32 %v1123_v37, %v1124_v30 }
 0x622   :  { %v1126_v52 = vrot.slane %v1125_v45, 1 }
 0x624   :  { %v1127_v57 = vmax.f32 %v1125_v45, %v1126_v52 }
 0x625   :  { %v3336_v13 = vpop.f32.mrf.mxu1 }
 0x626   :  { %v1118_v28 = vmax.f32 %v3336_v13, 0.0 }
 0x627   :  { %v2401_v49 = vpop.f32.mrf.mxu1 }
 0x628   :  { %v1120_v39 = vsel %vm3345_vm0, %v1118_v28, 0.0  ;;  %v64_v49 = vmax.f32 %v62_v56, %v63_v40 }
 0x629   :  { %v1128_v63 = vsel %vm54_vm13, %v1120_v39, -inf }
 0x62a   :  { %v1129_v35 = vrot.slane %v1128_v63, 4  ;;  %v65_v12 = vrot.slane %v64_v49, 2 }
 0x62c   :  { %v1130_v14 = vmax.f32 %v1128_v63, %v1129_v35  ;;  %v66_v22 = vmax.f32 %v64_v49, %v65_v12 }
 0x62e   :  { %v1131_v41 = vrot.slane %v1130_v14, 2  ;;  %v67_v39 = vrot.slane %v66_v22, 1 }
 0x630   :  { %v1132_v44 = vmax.f32 %v1130_v14, %v1131_v41  ;;  %v68_v11 = vmax.f32 %v66_v22, %v67_v39  ;;  %v2308_v41 = vld [vmem:[%s3434_s4 + $0x80] ss:$0 sm:$0xff]  ;;  %s2615_s4 = smov [#allocation6]  }
 0x631   :  { %s2247_s2 = sshll.u32 %s2615_s4, 4  ;;  %s2248_s2 = int_to_ptr.vmem [resolvable:$true] %s2247_s2 }
 0x632   :  { %v1133_v21 = vrot.slane %v1132_v44, 1  ;;  %s2560_s28 = scalar_lea.vmem %s2248_s2, 512  ;;  %p2565_p6 = scmp.lt.s32.totalorder %s2248_s2, %s2248_s2 }
 0x633   :  { %p2561_p5 = scmp.ne.s32.totalorder %s2248_s2, %s2560_s28  ;;  %p2566_p7 = scmp.lt.s32.totalorder %s2560_s28, %s2560_s28 }
 0x634   :  { %v1134_v32 = vmax.f32 %v1132_v44, %v1133_v21 }
 0x635   :  { %v3338_v19 = vpop.f32.mrf.mxu1  ;;  %p2567_p8 = por %p2566_p7, %p2565_p6 }
 0x636   :  { %v1817_v15 = vmax.f32 %v3338_v19, 0.0  ;;  %v1840_v50 = vsel %vm651_vm6, %v1134_v32, %v1127_v57 }
 0x637   :  { %v2406_v46 = vpop.f32.mrf.mxu1  ;;  %p2568_p9 = pnand %p2567_p8, %p2561_p5 }
 0x638   :  { %v1819_v0 = vsel %vm3351_vm7, %v1817_v15, 0.0  ;;  %v58_v46 = vrot.slane %v57_v4, 2 }
 0x639   :  { %v1821_v33 = vsel %vm54_vm13, %v1819_v0, -inf  ;;  %v2020_v0 = vpop.permute.xlu0 %2019 }
 0x63a   :  { %v1822_v38 = vrot.slane %v1821_v33, 4  ;;  %v59_v17 = vmax.f32 %v57_v4, %v58_v46 }
 0x63c   :  { %v1823_v53 = vmax.f32 %v1821_v33, %v1822_v38  ;;  %v60_v23 = vrot.slane %v59_v17, 1 }
 0x63d   :  { %v2016_v63 = vpop.permute.xlu0 %2015 }
 0x63e   :  { %v1824_v31 = vrot.slane %v1823_v53, 2  ;;  %v61_v9 = vmax.f32 %v59_v17, %v60_v23 }
 0x640   :  { %v1825_v58 = vmax.f32 %v1823_v53, %v1824_v31  ;;  %v1938_v61 = vsel %vm651_vm6, %v68_v11, %v61_v9 }
 0x641   :  { %2432 = vmatmul.mubr.msk.f32.vlgmr.msra.gmra.mxu0 %vm54_vm13, %v1938_v61 }
 0x642   :  { %v1826_v54 = vrot.slane %v1825_v58, 1 }
 0x644   :  { %v1827_v59 = vmax.f32 %v1825_v58, %v1826_v54 }
 0x66e   :  { %v3370_v34 = vpop.f32.mrf.mxu1 }
 0x66f   :  { %v1818_v5 = vmax.f32 %v3370_v34, 0.0 }
 0x670   :  { %v2411_v7 = vpop.f32.mrf.mxu1 }
 0x671   :  { %v1820_v6 = vsel %vm3345_vm0, %v1818_v5, 0.0 }
 0x672   :  { %v1828_v47 = vsel %vm54_vm13, %v1820_v6, -inf }
 0x673   :  { %v1829_v27 = vrot.slane %v1828_v47, 4 }
 0x675   :  { %v1830_v55 = vmax.f32 %v1828_v47, %v1829_v27 }
 0x677   :  { %v1831_v48 = vrot.slane %v1830_v55, 2 }
 0x679   :  { %v1832_v26 = vmax.f32 %v1830_v55, %v1831_v48 }
 0x67b   :  { %v1833_v29 = vrot.slane %v1832_v26, 1 }
 0x67d   :  { %v1834_v10 = vmax.f32 %v1832_v26, %v1833_v29 }
 0x67f   :  { %v1844_v42 = vsel %vm655_vm8, %v1834_v10, %v1827_v59  ;;  %v2614_v59 = vmov 1966171168  }
 0x680   :  { %v1847_v51 = vsel %vm1846_vm9, %v1840_v50, %v1844_v42  ;;  %v2134_v10 = vunpack.c.l.s4 %v2614_v59 }
 0x681   :  { %2421 = vmatmul.mubr.msk.f32.vlgmr.msra.gmra.mxu1 %vm54_vm13, %v1847_v51 }
 0x682   :  { %2442 = vmatprep.mubr.msk.f32.mxu1 %vm2611_vm1, %v2608_v8  ;;  %2435 = vmatpush3.msra.mxu1 %v2022_v25  ;;  %v2135_v50 = vunpack.c.0.s8 %v2134_v10 }
 0x683   :  { %2436 = vmatprep.subr.mxu1 %v2608_v8 }
 0x684   :  { %2437 = vmatpush3.msra.mxu1 %v2020_v0  ;;  %v2138_v42 = vsub.s32 %v2135_v50, %v2709_v20 }
 0x685   :  { %2438 = vmatprep.subr.mxu1 %v2608_v8 }
 0x686   :  { %2439 = vmatpush3.msra.mxu1 %v2018_v24 }
 0x687   :  { %2440 = vmatprep.subr.mxu1 %v2608_v8 }
 0x688   :  { %2441 = vmatpush3.msra.mxu1 %v2016_v63 }
 0x701   :  { %v2007_v14 = vpop.f32.mrf.mxu0 }
 0x702   :  { %v2108_v53 = vrot.slane %v2007_v14, 6 }
 0x703   :  { %v2433_v37 = vpop.f32.mrf.mxu0 }
 0x741   :  { %v1926_v33 = vpop.f32.mrf.mxu1 }
 0x742   :  { %v1927_v35 = vadd.f32 %v2304_v43, %v1926_v33 }
 0x743   :  { %v2422_v18 = vpop.f32.mrf.mxu1 }
 0x744   :  { %2540 = vtanh.f32 %v1927_v35 }
 0x751   :  { %v2541_v38 = vpop.eup %2540 }
 0x752   :  { %2443 = vmatmul.mubr.msk.f32.vlgmr.msra.gmra.mxu1 %vm54_vm13, %v2541_v38 }
 0x812   :  { %v2096_v8 = vpop.f32.mrf.mxu1 }
 0x813   :  { %v2100_v7 = vadd.f32 %v2096_v8, %v2007_v14  ;;  %v2110_v30 = vadd.f32 %v2108_v53, %v2096_v8 }
 0x814   :  { %v2444_v31 = vpop.f32.mrf.mxu1 }
 0x815   :  { %v2105_v6 = vadd.f32 %v2308_v41, %v2100_v7  ;;  %v2111_v47 = vadd.f32 %v2308_v41, %v2110_v30 }
 0x817   :  { %v2112_v44 = vmax.f32 %v2111_v47, 0.0  ;;  %v2106_v27 = vmax.f32 %v2105_v6, 0.0 }
 0x819   :  { %v2114_v45 = vrot.slane %v2112_v44, 2 }
 0x81b   :  { %v2116_v58 = vmax.f32 %v2106_v27, %v2114_v45 }
 0x81d   :  { %v2117_v55 = vsub.f32 %v2106_v27, %v2116_v58  ;;  %v2121_v21 = vrot.slane %v2116_v58, 6 }
 0x81f   :  { %v2123_v48 = vsub.f32 %v2112_v44, %v2121_v21  ;;  %v2118_v52 = vmul.f32 1.442695, %v2117_v55 }
 0x821   :  { %v2124_v54 = vmul.f32 1.442695, %v2123_v48 }
 0x823   :  { %2542 = vpow2.f32 %v2124_v54 }
 0x824   :  { %2544 = vpow2.f32 %v2118_v52 }
 0x830   :  { %v2543_v26 = vpop.eup %2542 }
 0x831   :  { %v2127_v32 = vrot.slane %v2543_v26, 2  ;;  %v2545_v29 = vpop.eup %2544 }
 0x833   :  { %v2129_v57 = vadd.f32 %v2545_v29, %v2127_v32 }
 0x835   :  { %2546 = vrcp.f32 %v2129_v57 }
 0x842   :  { %v2547_v51 = vpop.eup %2546 }
 0x843   :  { %v2131_v60 = vmul.f32 %v2547_v51, %v2545_v29  ;;  %v2176_v36 = vrot.slane %v2547_v51, 6 }
 0x845   :  { %v2139_v62 = vrot.slane %v2131_v60, %v2138_v42  ;;  %v2178_v56 = vmul.f32 %v2543_v26, %v2176_v36 }
 0x847   :  { %v2147_v1 = vrot.slane %v2139_v62, %v2138_v42  ;;  %v2140_v40 = vcombine.high %v2139_v62, %v2139_v62  ;;  %v2186_v4 = vrot.slane %v2178_v56, %v2138_v42 }
 0x849   :  { %v2158_v49 = vrot.slane %v2147_v1, %v2811_v3  ;;  %v2154_v46 = vrot.slane %v2140_v40, %v2138_v42  ;;  %v2194_v12 = vrot.slane %v2186_v4, %v2138_v42  ;;  %v2187_v17 = vcombine.high %v2186_v4, %v2186_v4 }
 0x84b   :  { %2164 = vperm.xlu1 %2459, %v2158_v49   ;;  %v2162_v22 = vrot.slane %v2154_v46, %v2811_v3  ;;  %v2202_v23 = vcombine.high %v2194_v12, %v2194_v12  ;;  %v2201_v39 = vrot.slane %v2187_v17, %v2138_v42 }
 0x84d   :  { %2168 = vperm.xlu0 %2458, %v2162_v22   ;;  %v2207_v20 = vrot.slane %v2202_v23, %v2811_v3  ;;  %v2203_v9 = vcombine.high %v2201_v39, %v2201_v39 }
 0x84f   :  { %2213 = vperm.xlu1 %2459, %v2207_v20   ;;  %v2211_v11 = vrot.slane %v2203_v9, %v2811_v3 }
 0x851   :  { %2217 = vperm.xlu0 %2458, %v2211_v11  }
 0x852   :  { %2571 = shalt.err (!%p2568_p9)
}
 0x853   :  { %s2616_s0 = smov 128   ;;  %s2617_s29 = smov 8  }
 0x854   :  { %2253 = dma.vmem_to_hbm [thread:$0]  %s2248_s2, 512, %s3436_s6, [#allocation7], %s2616_s0, %s2616_s0, %s2617_s29  }
 0x855   :  { %s2618_s6 = smov [#allocation4]  }
 0x856   :  { %s2235_s8 = sshll.u32 %s2618_s6, 4  ;;  %s2236_s8 = int_to_ptr.vmem [resolvable:$true] %s2235_s8 }
 0x857   :  { %s2580_s9 = scalar_lea.vmem %s2236_s8, 256  ;;  %p2585_p11 = scmp.lt.s32.totalorder %s2236_s8, %s2236_s8 }
 0x858   :  { %p2581_p10 = scmp.ne.s32.totalorder %s2236_s8, %s2580_s9  ;;  %p2586_p12 = scmp.lt.s32.totalorder %s2580_s9, %s2580_s9 }
 0x85a   :  { %p2587_p13 = por %p2586_p12, %p2585_p11 }
 0x85c   :  { %p2588_p0 = pnand %p2587_p13, %p2581_p10 }
 0x8c6   :  { %v2165_v3 = vpop.permute.xlu1 %2164 }
 0x8c7   :  { %v2171_v61 = vmul.f32 %v2165_v3, %v1117_v16 }
 0x8c8   :  { %v2169_v25 = vpop.permute.xlu0 %2168 }
 0x8c9   :  { %v2172_v43 = vmul.f32 %v2169_v25, %v1118_v28 }
 0x8ca   :  { %v2214_v0 = vpop.permute.xlu1 %2213 }
 0x8cb   :  { %v2220_v24 = vmul.f32 %v2214_v0, %v1817_v15 }
 0x8cc   :  { %v2218_v63 = vpop.permute.xlu0 %2217 }
 0x8cd   :  { %v2222_v33 = vadd.f32 %v2220_v24, %v2171_v61  ;;  %v2221_v35 = vmul.f32 %v2218_v63, %v1818_v5 }
 0x8cf   :  { %v2224_v18 = vmul.f32 0.5, %v2222_v33  ;;  %v2223_v38 = vadd.f32 %v2221_v35, %v2172_v43 }
 0x8d1   :  { %v2226_v14 = vmax.f32 %v2224_v18, 0.0  ;;  %v2225_v37 = vmul.f32 0.5, %v2223_v38 }
 0x8d3   :  { %2228 = vst.msk [vmem:[#allocation4] sm:$0xff] %vm54_vm13, %v2226_v14  ;;  %v2227_v2 = vmax.f32 %v2225_v37, 0.0 }
 0x8d5   :  { %2229 = vst.msk [vmem:[#allocation4 + $0x8] sm:$0xff] %vm54_vm13, %v2227_v2 }
 0x8d6   :  { %2591 = shalt.err (!%p2588_p0)
}
 0x8d7   :  { %2241 = dma.vmem_to_hbm [thread:$0]  %s2236_s8, 256, %s3435_s5, [#allocation5], %s2616_s0, %s2616_s0, %s2617_s29  }
 0x8d8   :  { %2602 = dma.done.wait [#allocation5], 256  }
 0x8d9   :  { %2603 = vsyncadd [#allocation5], 4294967040 }
 0x8da   :  { %2604 = dma.done.wait [#allocation7], 512  }
 0x8db   :  { %2605 = vsyncadd [#allocation7], 4294966784 }
 0x8dc   :  { %2260 = vsyncpa [#allocation5], 1 }
 0x8dd   :  { %2261 = vsyncpa [#allocation7], 1 }

</bundles_post_ra>
